<compile_context>
chip_gen: v5e
topology: v5e:2x2
jax: 0.10.0
libtpu: 0.0.40
codegen_flags: <defaults>
</compile_context>

<pallas_src>
import functools

import jax
import jax.numpy as jnp
from jax.experimental import pallas as pl
from jax.experimental.pallas import tpu as pltpu


def _round_up(x, m):
    return (x + m - 1) // m * m


# ----------------------------- Pallas kernel -------------------------------

def _make_block_kernel(Ho, Wo, Wp, Kh, Kw, Cp, has_ds):
    """Fused basic block for one image (one grid step).

    All spatial tensors inside the kernel are kept flattened with a common
    row stride Wp = Wo + 2, so each conv tap is a single contiguous
    (sublane-offset) slice of a 2-D VMEM buffer feeding the MXU directly.
    """
    HoWp = Ho * Wp

    def kernel(*refs):
        if has_ds:
            (xin_ref, pd_ref, w1_ref, b1_ref, w2_ref, bres_ref, wd_ref,
             msk_ref, out_ref, pad_ref, acc_ref) = refs
        else:
            (xin_ref, w1_ref, b1_ref, w2_ref, bres_ref, msk_ref,
             out_ref, pad_ref, acc_ref) = refs
        pad_rows = pad_ref.shape[0]

        # ---- conv1: Kh*Kw shifted matmuls over the staged input (BN1 scale
        # is folded into w1; bias + ReLU below).
        acc_ref[...] = jnp.dot(xin_ref[pl.ds(0, HoWp), :], w1_ref[0],
                               preferred_element_type=jnp.float32)
        for t in range(1, Kh * Kw):
            kh, kw = divmod(t, Kw)
            acc_ref[...] += jnp.dot(xin_ref[pl.ds(kh * Wp + kw, HoWp), :],
                                    w1_ref[t],
                                    preferred_element_type=jnp.float32)

        # Bias + ReLU; zero the columns outside the real image (wo >= Wo) so
        # the interior store below also refreshes conv2's zero-halo columns.
        o1 = jnp.maximum(acc_ref[...] + b1_ref[...], 0.0) * msk_ref[...]
        o1 = o1.astype(jnp.bfloat16)

        # ---- stage out1 into the flattened zero-haloed bf16 scratch.  Only
        # the halo rows are re-zeroed; the interior is one contiguous store.
        top = Wp + 1                      # top halo row + row-1 left halo px
        bot = (Ho + 1) * Wp + 1           # first row past the interior store
        pad_ref[pl.ds(0, top), :] = jnp.zeros((top, Cp), jnp.bfloat16)
        pad_ref[pl.ds(bot, pad_rows - bot), :] = jnp.zeros(
            (pad_rows - bot, Cp), jnp.bfloat16)
        pad_ref[pl.ds(top, HoWp), :] = o1

        # ---- identity / downsample path, (b2 [+ bd]) bias fused in.
        if has_ds:
            acc_ref[...] = (jnp.dot(pd_ref[...], wd_ref[...],
                                    preferred_element_type=jnp.float32)
                            + bres_ref[...])
        else:
            # stride == 1 and Cin == Cout: the identity pixels already live in
            # the staged conv1 input; add them directly (no eye-matmul).
            acc_ref[...] = (xin_ref[pl.ds(Wp + 1, HoWp), :]
                            .astype(jnp.float32) + bres_ref[...])

        # ---- conv2 (3x3, stride 1, pad 1): 9 shifted matmuls over the
        # VMEM-resident bf16 out1 tile (BN2 scale folded into w2).
        for t in range(9):
            kh, kw = divmod(t, 3)
            acc_ref[...] += jnp.dot(pad_ref[pl.ds(kh * Wp + kw, HoWp), :],
                                    w2_ref[t],
                                    preferred_element_type=jnp.float32)

        # ---- residual already included; final ReLU + bf16 lane-dense store.
        out_ref[...] = jnp.maximum(acc_ref[...], 0.0).astype(jnp.bfloat16)

    return kernel


# ------------------------------ JAX glue -----------------------------------

def _fold_bn(gamma, beta, mean, var, eps=1e-5):
    scale = gamma / jnp.sqrt(var + eps)
    bias = beta - mean * scale
    return scale, bias


@functools.partial(jax.jit, static_argnames=("stride",))
def basic_block_forward(x_nchw, params, *, stride):
    x = jnp.transpose(x_nchw, (0, 2, 3, 1)).astype(jnp.float32)  # NCHW->NHWC
    N, H, W, Cin = x.shape
    Cout = params["w1"].shape[0]
    has_ds = (stride != 1) or (Cin != Cout)

    Ho = (H + 2 - 3) // stride + 1
    Wo = (W + 2 - 3) // stride + 1
    Wp = Wo + 2                              # common padded row width
    HoWp = Ho * Wp
    Cp = _round_up(Cout, 128)
    pc = Cp - Cout

    # --- BN folding (inference stats): scales into weights, biases separate.
    s1, b1 = _fold_bn(params["g1"], params["be1"], params["m1"], params["v1"])
    s2, b2 = _fold_bn(params["g2"], params["be2"], params["m2"], params["v2"])
    w1_k = jnp.transpose(params["w1"], (2, 3, 1, 0)) * s1       # (3,3,Cin,Co)
    w2_k = jnp.transpose(params["w2"], (2, 3, 1, 0)) * s2       # (3,3,Co,Co)
    w2_taps = jnp.pad(w2_k.reshape(9, Cout, Cout),
                      ((0, 0), (0, pc), (0, pc))).astype(jnp.bfloat16)
    b1p = jnp.pad(b1, (0, pc)).reshape(1, Cp).astype(jnp.float32)

    # --- stage the conv1 input ONCE, flat & padded-width (no 9x im2col) ----
    if stride == 1:
        Kh = Kw = 3
        Kin = Cin
        xp = jnp.pad(x, ((0, 0), (1, 1), (1, 1), (0, 0)))       # (N,H+2,W+2,C)
        in_rows_used = (Ho + 2) * Wp
        xin = xp.reshape(N, in_rows_used, Kin)
        w1_taps = w1_k.reshape(9, Cin, Cout)
    else:
        # stride == 2: space-to-depth, so conv1 becomes a 2x2 stride-1 conv.
        Kh = Kw = 2
        Kin = 4 * Cin
        Hs = (H + 3) // 2                                        # = Ho + 1
        Ws = (W + 3) // 2                                        # = Wo + 1
        xp = jnp.pad(x, ((0, 0), (1, 2 * Hs - H - 1),
                         (1, 2 * Ws - W - 1), (0, 0)))
        xsd = xp.reshape(N, Hs, 2, Ws, 2, Cin)
        xsd = jnp.transpose(xsd, (0, 1, 3, 2, 4, 5)).reshape(N, Hs, Ws, Kin)
        xsd = jnp.pad(xsd, ((0, 0), (0, 0), (0, Wp - Ws), (0, 0)))
        in_rows_used = Hs * Wp
        xin = xsd.reshape(N, in_rows_used, Kin)
        # scatter the 3x3 taps into the (2,2) space-to-depth taps
        w1_p = jnp.pad(w1_k, ((0, 1), (0, 1), (0, 0), (0, 0)))   # (4,4,Cin,Co)
        w1_p = w1_p.reshape(2, 2, 2, 2, Cin, Cout)               # (si,di,sj,dj)
        w1_p = jnp.transpose(w1_p, (0, 2, 1, 3, 4, 5))           # (si,sj,di,dj)
        w1_taps = w1_p.reshape(Kh * Kw, Kin, Cout)

    if not has_ds:
        # Identity is read straight out of the staged conv1 input in-kernel,
        # so pad its channels to Cp (and w1's contraction dim to match).
        xin = jnp.pad(xin, ((0, 0), (0, 0), (0, Cp - Kin)))
        w1_taps = jnp.pad(w1_taps, ((0, 0), (0, Cp - Kin), (0, 0)))
        Kin = Cp

    in_rows = _round_up(in_rows_used + Kw, 8)
    xin = jnp.pad(xin, ((0, 0), (0, in_rows - in_rows_used), (0, 0)))
    xin = xin.astype(jnp.bfloat16)
    w1_taps = jnp.pad(w1_taps, ((0, 0), (0, 0), (0, pc))).astype(jnp.bfloat16)

    # --- inputs / specs (order must match the kernel's ref unpacking) -------
    inputs = [xin]
    in_specs = [pl.BlockSpec((None, in_rows, Kin), lambda n: (n, 0, 0))]
    if has_ds:
        sd_, bd = _fold_bn(params["gd"], params["bed"],
                           params["md"], params["vd"])
        wdp = jnp.pad(params["wd"][:, :, 0, 0].T * sd_,
                      ((0, 0), (0, pc))).astype(jnp.bfloat16)     # (Cin, Cp)
        bres = b2 + bd
        xs = x[:, ::stride, ::stride, :][:, :Ho, :Wo, :]
        pd = jnp.pad(xs, ((0, 0), (0, 0), (0, Wp - Wo), (0, 0)))
        pd = pd.reshape(N, HoWp, Cin).astype(jnp.bfloat16)
        inputs.append(pd)
        in_specs.append(pl.BlockSpec((None, HoWp, Cin), lambda n: (n, 0, 0)))
    else:
        bres = b2
    bresp = jnp.pad(bres, (0, pc)).reshape(1, Cp).astype(jnp.float32)

    inputs += [w1_taps, b1p, w2_taps, bresp]
    in_specs += [
        pl.BlockSpec((Kh * Kw, Kin, Cp), lambda n: (0, 0, 0)),
        pl.BlockSpec((1, Cp), lambda n: (0, 0)),
        pl.BlockSpec((9, Cp, Cp), lambda n: (0, 0, 0)),
        pl.BlockSpec((1, Cp), lambda n: (0, 0)),
    ]
    if has_ds:
        inputs.append(wdp)
        in_specs.append(pl.BlockSpec((Cin, Cp), lambda n: (0, 0)))

    # column mask (1 inside the real image, 0 in the padded-width columns)
    msk = jnp.tile((jnp.arange(Wp) < Wo).astype(jnp.float32), Ho)
    msk = msk.reshape(HoWp, 1)
    inputs.append(msk)
    in_specs.append(pl.BlockSpec((HoWp, 1), lambda n: (0, 0)))

    pad_rows = _round_up((Ho + 2) * Wp + 3, 8)
    kernel = _make_block_kernel(Ho, Wo, Wp, Kh, Kw, Cp, has_ds)

    grid_spec = pltpu.PrefetchScalarGridSpec(
        num_scalar_prefetch=0,
        grid=(N,),
        in_specs=in_specs,
        out_specs=pl.BlockSpec((None, HoWp, Cp), lambda n: (n, 0, 0)),
        scratch_shapes=[pltpu.VMEM((pad_rows, Cp), jnp.bfloat16),   # out1 pad
                        pltpu.VMEM((HoWp, Cp), jnp.float32)],       # f32 acc
    )

    flops = 2 * N * Ho * Wo * Cout * (9 * Cin + 9 * Cout
                                      + (Cin if has_ds else 0))
    bytes_accessed = (N * HoWp * Cp * 2
                      + sum(int(a.size) * a.dtype.itemsize for a in inputs))

    out = pl.pallas_call(
        kernel,
        out_shape=jax.ShapeDtypeStruct((N, HoWp, Cp), jnp.bfloat16),
        grid_spec=grid_spec,
        compiler_params=pltpu.CompilerParams(
            dimension_semantics=("parallel",),
            vmem_limit_bytes=32 * 1024 * 1024),
        cost_estimate=pl.CostEstimate(flops=flops, transcendentals=0,
                                      bytes_accessed=bytes_accessed),
    )(*inputs)

    out = out.astype(jnp.float32).reshape(N, Ho, Wp, Cp)[:, :, :Wo, :Cout]
    return jnp.transpose(out, (0, 3, 1, 2))                     # NHWC -> NCHW


# --------------------------- pure-JAX reference -----------------------------

def _ref_forward(x, params, stride):
    def conv(x, w, s, p):
        return jax.lax.conv_general_dilated(
            x, w, (s, s), [(p, p), (p, p)],
            dimension_numbers=("NCHW", "OIHW", "NCHW"))

    def bn(x, g, b, m, v):
        sc = g / jnp.sqrt(v + 1e-5)
        return x * sc[None, :, None, None] + (b - m * sc)[None, :, None, None]

    out = conv(x, params["w1"], stride, 1)
    out = bn(out, params["g1"], params["be1"], params["m1"], params["v1"])
    out = jnp.maximum(out, 0.0)
    out = conv(out, params["w2"], 1, 1)
    out = bn(out, params["g2"], params["be2"], params["m2"], params["v2"])
    identity = x
    if stride != 1 or x.shape[1] != params["w1"].shape[0]:
        identity = conv(x, params["wd"], stride, 0)
        identity = bn(identity, params["gd"], params["bed"], params["md"],
                      params["vd"])
    return jnp.maximum(out + identity, 0.0)


# --------------------------------- main --------------------------------------

if __name__ == "__main__":
    key = jax.random.PRNGKey(0)
    N, Cin, H, W = 2, 4, 16, 16
    Cout, stride = 8, 2

    ks = jax.random.split(key, 4)
    x = jax.random.normal(ks[0], (N, Cin, H, W), jnp.float32)

    def bn_params(c, off):
        return (1.0 + 0.01 * (jnp.arange(c, dtype=jnp.float32) + off),  # gamma
                0.02 * (jnp.arange(c, dtype=jnp.float32) - off),        # beta
                0.03 * (jnp.arange(c, dtype=jnp.float32) + off),        # mean
                1.0 + 0.05 * jnp.arange(c, dtype=jnp.float32))          # var

    g1, be1, m1, v1 = bn_params(Cout, 0)
    g2, be2, m2, v2 = bn_params(Cout, 1)
    gd, bed, md, vd = bn_params(Cout, 2)

    params = dict(
        w1=0.1 * jax.random.normal(ks[1], (Cout, Cin, 3, 3), jnp.float32),
        w2=0.1 * jax.random.normal(ks[2], (Cout, Cout, 3, 3), jnp.float32),
        wd=0.1 * jax.random.normal(ks[3], (Cout, Cin, 1, 1), jnp.float32),
        g1=g1, be1=be1, m1=m1, v1=v1,
        g2=g2, be2=be2, m2=m2, v2=v2,
        gd=gd, bed=bed, md=md, vd=vd,
    )

    out = basic_block_forward(x, params, stride=stride)
    out = jax.block_until_ready(out)

    ref = jax.block_until_ready(_ref_forward(x, params, stride))
    assert out.shape == (N, Cout, H // stride, W // stride), out.shape
    # bf16 activations/weights/output inside the kernel -> loose tolerance.
    assert jnp.allclose(out, ref, atol=5e-2, rtol=5e-2), \
        float(jnp.max(jnp.abs(out - ref)))

    print("KERNEL_OK")
</pallas_src>

<mosaic_0001>
module attributes {stable_mosaic.version = 11 : i64} {
  func.func @kernel(%arg0: i32, %arg1: memref<1x96x16xbf16, #tpu.memory_space<vmem>>, %arg2: memref<1x80x4xbf16, #tpu.memory_space<vmem>>, %arg3: memref<4x16x128xbf16, #tpu.memory_space<vmem>>, %arg4: memref<1x128xf32, #tpu.memory_space<vmem>>, %arg5: memref<9x128x128xbf16, #tpu.memory_space<vmem>>, %arg6: memref<1x128xf32, #tpu.memory_space<vmem>>, %arg7: memref<4x128xbf16, #tpu.memory_space<vmem>>, %arg8: memref<80x1xf32, #tpu.memory_space<vmem>>, %arg9: memref<1x80x128xbf16, #tpu.memory_space<vmem>>, %arg10: memref<104x128xbf16, #tpu.memory_space<vmem>>, %arg11: memref<80x128xf32, #tpu.memory_space<vmem>>) attributes {dimension_semantics = [#tpu.dimension_semantics<parallel>], iteration_bounds = array<i64: 2>, scalar_prefetch = 0 : i64, scratch_operands = 2 : i64, tpu.core_type = #tpu.core_type<tc>, window_params = [{transform_indices = @transform_0, window_bounds = array<i64: 1, 96, 16>}, {transform_indices = @transform_1, window_bounds = array<i64: 1, 80, 4>}, {pipeline_mode = #tpu.pipeline_mode<synchronous>, transform_indices = @transform_2, window_bounds = array<i64: 4, 16, 128>}, {pipeline_mode = #tpu.pipeline_mode<synchronous>, transform_indices = @transform_3, window_bounds = array<i64: 1, 128>}, {pipeline_mode = #tpu.pipeline_mode<synchronous>, transform_indices = @transform_4, window_bounds = array<i64: 9, 128, 128>}, {pipeline_mode = #tpu.pipeline_mode<synchronous>, transform_indices = @transform_5, window_bounds = array<i64: 1, 128>}, {pipeline_mode = #tpu.pipeline_mode<synchronous>, transform_indices = @transform_6, window_bounds = array<i64: 4, 128>}, {pipeline_mode = #tpu.pipeline_mode<synchronous>, transform_indices = @transform_7, window_bounds = array<i64: 80, 1>}, {transform_indices = @transform_8, window_bounds = array<i64: 1, 80, 128>}]} {
    %c0 = arith.constant 0 : index
    %c0_0 = arith.constant 0 : index
    %c0_1 = arith.constant 0 : index
    %0 = vector.load %arg1[%c0, %c0_0, %c0_1] : memref<1x96x16xbf16, #tpu.memory_space<vmem>>, vector<1x80x16xbf16>
    %1 = vector.shape_cast %0 : vector<1x80x16xbf16> to vector<80x16xbf16>
    %c0_2 = arith.constant 0 : index
    %c0_3 = arith.constant 0 : index
    %c0_4 = arith.constant 0 : index
    %2 = vector.load %arg3[%c0_2, %c0_3, %c0_4] : memref<4x16x128xbf16, #tpu.memory_space<vmem>>, vector<1x16x128xbf16>
    %3 = vector.shape_cast %2 : vector<1x16x128xbf16> to vector<16x128xbf16>
    %cst = arith.constant dense<0.000000e+00> : vector<80x128xf32>
    %4 = tpu.matmul %1, %3, %cst {dimension_numbers = #tpu.dot_dimension_numbers<[1], [0], [0], [1], [0, 0, 1, 1], [], []>} : vector<80x16xbf16>, vector<16x128xbf16>, vector<80x128xf32> -> vector<80x128xf32>
    %c0_5 = arith.constant 0 : index
    %c0_6 = arith.constant 0 : index
    %5 = vector.load %arg11[%c0_5, %c0_6] : memref<80x128xf32, #tpu.memory_space<vmem>>, vector<80x128xf32>
    tpu.vector_store %arg11[%c0_5, %c0_6], %4 {strides = array<i32>} : memref<80x128xf32, #tpu.memory_space<vmem>>, vector<80x128xf32>,
    %c0_7 = arith.constant 0 : index
    %c0_8 = arith.constant 0 : index
    %6 = vector.load %arg11[%c0_7, %c0_8] : memref<80x128xf32, #tpu.memory_space<vmem>>, vector<80x128xf32>
    %c0_9 = arith.constant 0 : index
    %c1 = arith.constant 1 : index
    %c0_10 = arith.constant 0 : index
    %7 = vector.load %arg1[%c0_9, %c1, %c0_10] : memref<1x96x16xbf16, #tpu.memory_space<vmem>>, vector<1x80x16xbf16>
    %8 = vector.shape_cast %7 : vector<1x80x16xbf16> to vector<80x16xbf16>
    %c1_11 = arith.constant 1 : index
    %c0_12 = arith.constant 0 : index
    %c0_13 = arith.constant 0 : index
    %9 = vector.load %arg3[%c1_11, %c0_12, %c0_13] : memref<4x16x128xbf16, #tpu.memory_space<vmem>>, vector<1x16x128xbf16>
    %10 = vector.shape_cast %9 : vector<1x16x128xbf16> to vector<16x128xbf16>
    %cst_14 = arith.constant dense<0.000000e+00> : vector<80x128xf32>
    %11 = tpu.matmul %8, %10, %cst_14 {dimension_numbers = #tpu.dot_dimension_numbers<[1], [0], [0], [1], [0, 0, 1, 1], [], []>} : vector<80x16xbf16>, vector<16x128xbf16>, vector<80x128xf32> -> vector<80x128xf32>
    %12 = arith.addf %6, %11 : vector<80x128xf32>
    %c0_15 = arith.constant 0 : index
    %c0_16 = arith.constant 0 : index
    %13 = vector.load %arg11[%c0_15, %c0_16] : memref<80x128xf32, #tpu.memory_space<vmem>>, vector<80x128xf32>
    tpu.vector_store %arg11[%c0_15, %c0_16], %12 {strides = array<i32>} : memref<80x128xf32, #tpu.memory_space<vmem>>, vector<80x128xf32>,
    %c0_17 = arith.constant 0 : index
    %c0_18 = arith.constant 0 : index
    %14 = vector.load %arg11[%c0_17, %c0_18] : memref<80x128xf32, #tpu.memory_space<vmem>>, vector<80x128xf32>
    %c0_19 = arith.constant 0 : index
    %c10 = arith.constant 10 : index
    %c0_20 = arith.constant 0 : index
    %15 = vector.load %arg1[%c0_19, %c10, %c0_20] : memref<1x96x16xbf16, #tpu.memory_space<vmem>>, vector<1x80x16xbf16>
    %16 = vector.shape_cast %15 : vector<1x80x16xbf16> to vector<80x16xbf16>
    %c2 = arith.constant 2 : index
    %c0_21 = arith.constant 0 : index
    %c0_22 = arith.constant 0 : index
    %17 = vector.load %arg3[%c2, %c0_21, %c0_22] : memref<4x16x128xbf16, #tpu.memory_space<vmem>>, vector<1x16x128xbf16>
    %18 = vector.shape_cast %17 : vector<1x16x128xbf16> to vector<16x128xbf16>
    %cst_23 = arith.constant dense<0.000000e+00> : vector<80x128xf32>
    %19 = tpu.matmul %16, %18, %cst_23 {dimension_numbers = #tpu.dot_dimension_numbers<[1], [0], [0], [1], [0, 0, 1, 1], [], []>} : vector<80x16xbf16>, vector<16x128xbf16>, vector<80x128xf32> -> vector<80x128xf32>
    %20 = arith.addf %14, %19 : vector<80x128xf32>
    %c0_24 = arith.constant 0 : index
    %c0_25 = arith.constant 0 : index
    %21 = vector.load %arg11[%c0_24, %c0_25] : memref<80x128xf32, #tpu.memory_space<vmem>>, vector<80x128xf32>
    tpu.vector_store %arg11[%c0_24, %c0_25], %20 {strides = array<i32>} : memref<80x128xf32, #tpu.memory_space<vmem>>, vector<80x128xf32>,
    %c0_26 = arith.constant 0 : index
    %c0_27 = arith.constant 0 : index
    %22 = vector.load %arg11[%c0_26, %c0_27] : memref<80x128xf32, #tpu.memory_space<vmem>>, vector<80x128xf32>
    %c0_28 = arith.constant 0 : index
    %c11 = arith.constant 11 : index
    %c0_29 = arith.constant 0 : index
    %23 = vector.load %arg1[%c0_28, %c11, %c0_29] : memref<1x96x16xbf16, #tpu.memory_space<vmem>>, vector<1x80x16xbf16>
    %24 = vector.shape_cast %23 : vector<1x80x16xbf16> to vector<80x16xbf16>
    %c3 = arith.constant 3 : index
    %c0_30 = arith.constant 0 : index
    %c0_31 = arith.constant 0 : index
    %25 = vector.load %arg3[%c3, %c0_30, %c0_31] : memref<4x16x128xbf16, #tpu.memory_space<vmem>>, vector<1x16x128xbf16>
    %26 = vector.shape_cast %25 : vector<1x16x128xbf16> to vector<16x128xbf16>
    %cst_32 = arith.constant dense<0.000000e+00> : vector<80x128xf32>
    %27 = tpu.matmul %24, %26, %cst_32 {dimension_numbers = #tpu.dot_dimension_numbers<[1], [0], [0], [1], [0, 0, 1, 1], [], []>} : vector<80x16xbf16>, vector<16x128xbf16>, vector<80x128xf32> -> vector<80x128xf32>
    %28 = arith.addf %22, %27 : vector<80x128xf32>
    %c0_33 = arith.constant 0 : index
    %c0_34 = arith.constant 0 : index
    %29 = vector.load %arg11[%c0_33, %c0_34] : memref<80x128xf32, #tpu.memory_space<vmem>>, vector<80x128xf32>
    tpu.vector_store %arg11[%c0_33, %c0_34], %28 {strides = array<i32>} : memref<80x128xf32, #tpu.memory_space<vmem>>, vector<80x128xf32>,
    %c0_35 = arith.constant 0 : index
    %c0_36 = arith.constant 0 : index
    %30 = vector.load %arg11[%c0_35, %c0_36] : memref<80x128xf32, #tpu.memory_space<vmem>>, vector<80x128xf32>
    %c0_37 = arith.constant 0 : index
    %c0_38 = arith.constant 0 : index
    %31 = vector.load %arg4[%c0_37, %c0_38] : memref<1x128xf32, #tpu.memory_space<vmem>>, vector<1x128xf32>
    %32 = vector.broadcast %31 : vector<1x128xf32> to vector<80x128xf32>
    %33 = arith.addf %30, %32 : vector<80x128xf32>
    %cst_39 = arith.constant 0.000000e+00 : f32
    %34 = vector.broadcast %cst_39 : f32 to vector<80x128xf32>
    %35 = arith.maximumf %33, %34 : vector<80x128xf32>
    %c0_40 = arith.constant 0 : index
    %c0_41 = arith.constant 0 : index
    %36 = vector.load %arg8[%c0_40, %c0_41] : memref<80x1xf32, #tpu.memory_space<vmem>>, vector<80x1xf32>
    %37 = vector.broadcast %36 : vector<80x1xf32> to vector<80x128xf32>
    %38 = arith.mulf %35, %37 : vector<80x128xf32>
    %39 = arith.truncf %38 : vector<80x128xf32> to vector<80x128xbf16>
    %cst_42 = arith.constant 0.000000e+00 : bf16
    %40 = vector.broadcast %cst_42 : bf16 to vector<11x128xbf16>
    %c0_43 = arith.constant 0 : index
    %c0_44 = arith.constant 0 : index
    %41 = vector.load %arg10[%c0_43, %c0_44] : memref<104x128xbf16, #tpu.memory_space<vmem>>, vector<11x128xbf16>
    tpu.vector_store %arg10[%c0_43, %c0_44], %40 {strides = array<i32>} : memref<104x128xbf16, #tpu.memory_space<vmem>>, vector<11x128xbf16>,
    %cst_45 = arith.constant 0.000000e+00 : bf16
    %42 = vector.broadcast %cst_45 : bf16 to vector<13x128xbf16>
    %c91 = arith.constant 91 : index
    %c0_46 = arith.constant 0 : index
    %43 = vector.load %arg10[%c91, %c0_46] : memref<104x128xbf16, #tpu.memory_space<vmem>>, vector<13x128xbf16>
    tpu.vector_store %arg10[%c91, %c0_46], %42 {strides = array<i32>} : memref<104x128xbf16, #tpu.memory_space<vmem>>, vector<13x128xbf16>,
    %c11_47 = arith.constant 11 : index
    %c0_48 = arith.constant 0 : index
    %44 = vector.load %arg10[%c11_47, %c0_48] : memref<104x128xbf16, #tpu.memory_space<vmem>>, vector<80x128xbf16>
    tpu.vector_store %arg10[%c11_47, %c0_48], %39 {strides = array<i32>} : memref<104x128xbf16, #tpu.memory_space<vmem>>, vector<80x128xbf16>,
    %c0_49 = arith.constant 0 : index
    %c0_50 = arith.constant 0 : index
    %c0_51 = arith.constant 0 : index
    %45 = vector.load %arg2[%c0_49, %c0_50, %c0_51] : memref<1x80x4xbf16, #tpu.memory_space<vmem>>, vector<1x80x4xbf16>
    %46 = vector.shape_cast %45 : vector<1x80x4xbf16> to vector<80x4xbf16>
    %c0_52 = arith.constant 0 : index
    %c0_53 = arith.constant 0 : index
    %47 = vector.load %arg7[%c0_52, %c0_53] : memref<4x128xbf16, #tpu.memory_space<vmem>>, vector<4x128xbf16>
    %cst_54 = arith.constant dense<0.000000e+00> : vector<80x128xf32>
    %48 = tpu.matmul %46, %47, %cst_54 {dimension_numbers = #tpu.dot_dimension_numbers<[1], [0], [0], [1], [0, 0, 1, 1], [], []>} : vector<80x4xbf16>, vector<4x128xbf16>, vector<80x128xf32> -> vector<80x128xf32>
    %c0_55 = arith.constant 0 : index
    %c0_56 = arith.constant 0 : index
    %49 = vector.load %arg6[%c0_55, %c0_56] : memref<1x128xf32, #tpu.memory_space<vmem>>, vector<1x128xf32>
    %50 = vector.broadcast %49 : vector<1x128xf32> to vector<80x128xf32>
    %51 = arith.addf %48, %50 : vector<80x128xf32>
    %c0_57 = arith.constant 0 : index
    %c0_58 = arith.constant 0 : index
    %52 = vector.load %arg11[%c0_57, %c0_58] : memref<80x128xf32, #tpu.memory_space<vmem>>, vector<80x128xf32>
    tpu.vector_store %arg11[%c0_57, %c0_58], %51 {strides = array<i32>} : memref<80x128xf32, #tpu.memory_space<vmem>>, vector<80x128xf32>,
    %c0_59 = arith.constant 0 : index
    %c0_60 = arith.constant 0 : index
    %53 = vector.load %arg11[%c0_59, %c0_60] : memref<80x128xf32, #tpu.memory_space<vmem>>, vector<80x128xf32>
    %c0_61 = arith.constant 0 : index
    %c0_62 = arith.constant 0 : index
    %54 = vector.load %arg10[%c0_61, %c0_62] : memref<104x128xbf16, #tpu.memory_space<vmem>>, vector<80x128xbf16>
    %c0_63 = arith.constant 0 : index
    %c0_64 = arith.constant 0 : index
    %c0_65 = arith.constant 0 : index
    %55 = vector.load %arg5[%c0_63, %c0_64, %c0_65] : memref<9x128x128xbf16, #tpu.memory_space<vmem>>, vector<1x128x128xbf16>
    %56 = vector.shape_cast %55 : vector<1x128x128xbf16> to vector<128x128xbf16>
    %cst_66 = arith.constant dense<0.000000e+00> : vector<80x128xf32>
    %57 = tpu.matmul %54, %56, %cst_66 {dimension_numbers = #tpu.dot_dimension_numbers<[1], [0], [0], [1], [0, 0, 1, 1], [], []>} : vector<80x128xbf16>, vector<128x128xbf16>, vector<80x128xf32> -> vector<80x128xf32>
    %58 = arith.addf %53, %57 : vector<80x128xf32>
    %c0_67 = arith.constant 0 : index
    %c0_68 = arith.constant 0 : index
    %59 = vector.load %arg11[%c0_67, %c0_68] : memref<80x128xf32, #tpu.memory_space<vmem>>, vector<80x128xf32>
    tpu.vector_store %arg11[%c0_67, %c0_68], %58 {strides = array<i32>} : memref<80x128xf32, #tpu.memory_space<vmem>>, vector<80x128xf32>,
    %c0_69 = arith.constant 0 : index
    %c0_70 = arith.constant 0 : index
    %60 = vector.load %arg11[%c0_69, %c0_70] : memref<80x128xf32, #tpu.memory_space<vmem>>, vector<80x128xf32>
    %c1_71 = arith.constant 1 : index
    %c0_72 = arith.constant 0 : index
    %61 = vector.load %arg10[%c1_71, %c0_72] : memref<104x128xbf16, #tpu.memory_space<vmem>>, vector<80x128xbf16>
    %c1_73 = arith.constant 1 : index
    %c0_74 = arith.constant 0 : index
    %c0_75 = arith.constant 0 : index
    %62 = vector.load %arg5[%c1_73, %c0_74, %c0_75] : memref<9x128x128xbf16, #tpu.memory_space<vmem>>, vector<1x128x128xbf16>
    %63 = vector.shape_cast %62 : vector<1x128x128xbf16> to vector<128x128xbf16>
    %cst_76 = arith.constant dense<0.000000e+00> : vector<80x128xf32>
    %64 = tpu.matmul %61, %63, %cst_76 {dimension_numbers = #tpu.dot_dimension_numbers<[1], [0], [0], [1], [0, 0, 1, 1], [], []>} : vector<80x128xbf16>, vector<128x128xbf16>, vector<80x128xf32> -> vector<80x128xf32>
    %65 = arith.addf %60, %64 : vector<80x128xf32>
    %c0_77 = arith.constant 0 : index
    %c0_78 = arith.constant 0 : index
    %66 = vector.load %arg11[%c0_77, %c0_78] : memref<80x128xf32, #tpu.memory_space<vmem>>, vector<80x128xf32>
    tpu.vector_store %arg11[%c0_77, %c0_78], %65 {strides = array<i32>} : memref<80x128xf32, #tpu.memory_space<vmem>>, vector<80x128xf32>,
    %c0_79 = arith.constant 0 : index
    %c0_80 = arith.constant 0 : index
    %67 = vector.load %arg11[%c0_79, %c0_80] : memref<80x128xf32, #tpu.memory_space<vmem>>, vector<80x128xf32>
    %c2_81 = arith.constant 2 : index
    %c0_82 = arith.constant 0 : index
    %68 = vector.load %arg10[%c2_81, %c0_82] : memref<104x128xbf16, #tpu.memory_space<vmem>>, vector<80x128xbf16>
    %c2_83 = arith.constant 2 : index
    %c0_84 = arith.constant 0 : index
    %c0_85 = arith.constant 0 : index
    %69 = vector.load %arg5[%c2_83, %c0_84, %c0_85] : memref<9x128x128xbf16, #tpu.memory_space<vmem>>, vector<1x128x128xbf16>
    %70 = vector.shape_cast %69 : vector<1x128x128xbf16> to vector<128x128xbf16>
    %cst_86 = arith.constant dense<0.000000e+00> : vector<80x128xf32>
    %71 = tpu.matmul %68, %70, %cst_86 {dimension_numbers = #tpu.dot_dimension_numbers<[1], [0], [0], [1], [0, 0, 1, 1], [], []>} : vector<80x128xbf16>, vector<128x128xbf16>, vector<80x128xf32> -> vector<80x128xf32>
    %72 = arith.addf %67, %71 : vector<80x128xf32>
    %c0_87 = arith.constant 0 : index
    %c0_88 = arith.constant 0 : index
    %73 = vector.load %arg11[%c0_87, %c0_88] : memref<80x128xf32, #tpu.memory_space<vmem>>, vector<80x128xf32>
    tpu.vector_store %arg11[%c0_87, %c0_88], %72 {strides = array<i32>} : memref<80x128xf32, #tpu.memory_space<vmem>>, vector<80x128xf32>,
    %c0_89 = arith.constant 0 : index
    %c0_90 = arith.constant 0 : index
    %74 = vector.load %arg11[%c0_89, %c0_90] : memref<80x128xf32, #tpu.memory_space<vmem>>, vector<80x128xf32>
    %c10_91 = arith.constant 10 : index
    %c0_92 = arith.constant 0 : index
    %75 = vector.load %arg10[%c10_91, %c0_92] : memref<104x128xbf16, #tpu.memory_space<vmem>>, vector<80x128xbf16>
    %c3_93 = arith.constant 3 : index
    %c0_94 = arith.constant 0 : index
    %c0_95 = arith.constant 0 : index
    %76 = vector.load %arg5[%c3_93, %c0_94, %c0_95] : memref<9x128x128xbf16, #tpu.memory_space<vmem>>, vector<1x128x128xbf16>
    %77 = vector.shape_cast %76 : vector<1x128x128xbf16> to vector<128x128xbf16>
    %cst_96 = arith.constant dense<0.000000e+00> : vector<80x128xf32>
    %78 = tpu.matmul %75, %77, %cst_96 {dimension_numbers = #tpu.dot_dimension_numbers<[1], [0], [0], [1], [0, 0, 1, 1], [], []>} : vector<80x128xbf16>, vector<128x128xbf16>, vector<80x128xf32> -> vector<80x128xf32>
    %79 = arith.addf %74, %78 : vector<80x128xf32>
    %c0_97 = arith.constant 0 : index
    %c0_98 = arith.constant 0 : index
    %80 = vector.load %arg11[%c0_97, %c0_98] : memref<80x128xf32, #tpu.memory_space<vmem>>, vector<80x128xf32>
    tpu.vector_store %arg11[%c0_97, %c0_98], %79 {strides = array<i32>} : memref<80x128xf32, #tpu.memory_space<vmem>>, vector<80x128xf32>,
    %c0_99 = arith.constant 0 : index
    %c0_100 = arith.constant 0 : index
    %81 = vector.load %arg11[%c0_99, %c0_100] : memref<80x128xf32, #tpu.memory_space<vmem>>, vector<80x128xf32>
    %c11_101 = arith.constant 11 : index
    %c0_102 = arith.constant 0 : index
    %82 = vector.load %arg10[%c11_101, %c0_102] : memref<104x128xbf16, #tpu.memory_space<vmem>>, vector<80x128xbf16>
    %c4 = arith.constant 4 : index
    %c0_103 = arith.constant 0 : index
    %c0_104 = arith.constant 0 : index
    %83 = vector.load %arg5[%c4, %c0_103, %c0_104] : memref<9x128x128xbf16, #tpu.memory_space<vmem>>, vector<1x128x128xbf16>
    %84 = vector.shape_cast %83 : vector<1x128x128xbf16> to vector<128x128xbf16>
    %cst_105 = arith.constant dense<0.000000e+00> : vector<80x128xf32>
    %85 = tpu.matmul %82, %84, %cst_105 {dimension_numbers = #tpu.dot_dimension_numbers<[1], [0], [0], [1], [0, 0, 1, 1], [], []>} : vector<80x128xbf16>, vector<128x128xbf16>, vector<80x128xf32> -> vector<80x128xf32>
    %86 = arith.addf %81, %85 : vector<80x128xf32>
    %c0_106 = arith.constant 0 : index
    %c0_107 = arith.constant 0 : index
    %87 = vector.load %arg11[%c0_106, %c0_107] : memref<80x128xf32, #tpu.memory_space<vmem>>, vector<80x128xf32>
    tpu.vector_store %arg11[%c0_106, %c0_107], %86 {strides = array<i32>} : memref<80x128xf32, #tpu.memory_space<vmem>>, vector<80x128xf32>,
    %c0_108 = arith.constant 0 : index
    %c0_109 = arith.constant 0 : index
    %88 = vector.load %arg11[%c0_108, %c0_109] : memref<80x128xf32, #tpu.memory_space<vmem>>, vector<80x128xf32>
    %c12 = arith.constant 12 : index
    %c0_110 = arith.constant 0 : index
    %89 = vector.load %arg10[%c12, %c0_110] : memref<104x128xbf16, #tpu.memory_space<vmem>>, vector<80x128xbf16>
    %c5 = arith.constant 5 : index
    %c0_111 = arith.constant 0 : index
    %c0_112 = arith.constant 0 : index
    %90 = vector.load %arg5[%c5, %c0_111, %c0_112] : memref<9x128x128xbf16, #tpu.memory_space<vmem>>, vector<1x128x128xbf16>
    %91 = vector.shape_cast %90 : vector<1x128x128xbf16> to vector<128x128xbf16>
    %cst_113 = arith.constant dense<0.000000e+00> : vector<80x128xf32>
    %92 = tpu.matmul %89, %91, %cst_113 {dimension_numbers = #tpu.dot_dimension_numbers<[1], [0], [0], [1], [0, 0, 1, 1], [], []>} : vector<80x128xbf16>, vector<128x128xbf16>, vector<80x128xf32> -> vector<80x128xf32>
    %93 = arith.addf %88, %92 : vector<80x128xf32>
    %c0_114 = arith.constant 0 : index
    %c0_115 = arith.constant 0 : index
    %94 = vector.load %arg11[%c0_114, %c0_115] : memref<80x128xf32, #tpu.memory_space<vmem>>, vector<80x128xf32>
    tpu.vector_store %arg11[%c0_114, %c0_115], %93 {strides = array<i32>} : memref<80x128xf32, #tpu.memory_space<vmem>>, vector<80x128xf32>,
    %c0_116 = arith.constant 0 : index
    %c0_117 = arith.constant 0 : index
    %95 = vector.load %arg11[%c0_116, %c0_117] : memref<80x128xf32, #tpu.memory_space<vmem>>, vector<80x128xf32>
    %c20 = arith.constant 20 : index
    %c0_118 = arith.constant 0 : index
    %96 = vector.load %arg10[%c20, %c0_118] : memref<104x128xbf16, #tpu.memory_space<vmem>>, vector<80x128xbf16>
    %c6 = arith.constant 6 : index
    %c0_119 = arith.constant 0 : index
    %c0_120 = arith.constant 0 : index
    %97 = vector.load %arg5[%c6, %c0_119, %c0_120] : memref<9x128x128xbf16, #tpu.memory_space<vmem>>, vector<1x128x128xbf16>
    %98 = vector.shape_cast %97 : vector<1x128x128xbf16> to vector<128x128xbf16>
    %cst_121 = arith.constant dense<0.000000e+00> : vector<80x128xf32>
    %99 = tpu.matmul %96, %98, %cst_121 {dimension_numbers = #tpu.dot_dimension_numbers<[1], [0], [0], [1], [0, 0, 1, 1], [], []>} : vector<80x128xbf16>, vector<128x128xbf16>, vector<80x128xf32> -> vector<80x128xf32>
    %100 = arith.addf %95, %99 : vector<80x128xf32>
    %c0_122 = arith.constant 0 : index
    %c0_123 = arith.constant 0 : index
    %101 = vector.load %arg11[%c0_122, %c0_123] : memref<80x128xf32, #tpu.memory_space<vmem>>, vector<80x128xf32>
    tpu.vector_store %arg11[%c0_122, %c0_123], %100 {strides = array<i32>} : memref<80x128xf32, #tpu.memory_space<vmem>>, vector<80x128xf32>,
    %c0_124 = arith.constant 0 : index
    %c0_125 = arith.constant 0 : index
    %102 = vector.load %arg11[%c0_124, %c0_125] : memref<80x128xf32, #tpu.memory_space<vmem>>, vector<80x128xf32>
    %c21 = arith.constant 21 : index
    %c0_126 = arith.constant 0 : index
    %103 = vector.load %arg10[%c21, %c0_126] : memref<104x128xbf16, #tpu.memory_space<vmem>>, vector<80x128xbf16>
    %c7 = arith.constant 7 : index
    %c0_127 = arith.constant 0 : index
    %c0_128 = arith.constant 0 : index
    %104 = vector.load %arg5[%c7, %c0_127, %c0_128] : memref<9x128x128xbf16, #tpu.memory_space<vmem>>, vector<1x128x128xbf16>
    %105 = vector.shape_cast %104 : vector<1x128x128xbf16> to vector<128x128xbf16>
    %cst_129 = arith.constant dense<0.000000e+00> : vector<80x128xf32>
    %106 = tpu.matmul %103, %105, %cst_129 {dimension_numbers = #tpu.dot_dimension_numbers<[1], [0], [0], [1], [0, 0, 1, 1], [], []>} : vector<80x128xbf16>, vector<128x128xbf16>, vector<80x128xf32> -> vector<80x128xf32>
    %107 = arith.addf %102, %106 : vector<80x128xf32>
    %c0_130 = arith.constant 0 : index
    %c0_131 = arith.constant 0 : index
    %108 = vector.load %arg11[%c0_130, %c0_131] : memref<80x128xf32, #tpu.memory_space<vmem>>, vector<80x128xf32>
    tpu.vector_store %arg11[%c0_130, %c0_131], %107 {strides = array<i32>} : memref<80x128xf32, #tpu.memory_space<vmem>>, vector<80x128xf32>,
    %c0_132 = arith.constant 0 : index
    %c0_133 = arith.constant 0 : index
    %109 = vector.load %arg11[%c0_132, %c0_133] : memref<80x128xf32, #tpu.memory_space<vmem>>, vector<80x128xf32>
    %c22 = arith.constant 22 : index
    %c0_134 = arith.constant 0 : index
    %110 = vector.load %arg10[%c22, %c0_134] : memref<104x128xbf16, #tpu.memory_space<vmem>>, vector<80x128xbf16>
    %c8 = arith.constant 8 : index
    %c0_135 = arith.constant 0 : index
    %c0_136 = arith.constant 0 : index
    %111 = vector.load %arg5[%c8, %c0_135, %c0_136] : memref<9x128x128xbf16, #tpu.memory_space<vmem>>, vector<1x128x128xbf16>
    %112 = vector.shape_cast %111 : vector<1x128x128xbf16> to vector<128x128xbf16>
    %cst_137 = arith.constant dense<0.000000e+00> : vector<80x128xf32>
    %113 = tpu.matmul %110, %112, %cst_137 {dimension_numbers = #tpu.dot_dimension_numbers<[1], [0], [0], [1], [0, 0, 1, 1], [], []>} : vector<80x128xbf16>, vector<128x128xbf16>, vector<80x128xf32> -> vector<80x128xf32>
    %114 = arith.addf %109, %113 : vector<80x128xf32>
    %c0_138 = arith.constant 0 : index
    %c0_139 = arith.constant 0 : index
    %115 = vector.load %arg11[%c0_138, %c0_139] : memref<80x128xf32, #tpu.memory_space<vmem>>, vector<80x128xf32>
    tpu.vector_store %arg11[%c0_138, %c0_139], %114 {strides = array<i32>} : memref<80x128xf32, #tpu.memory_space<vmem>>, vector<80x128xf32>,
    %c0_140 = arith.constant 0 : index
    %c0_141 = arith.constant 0 : index
    %116 = vector.load %arg11[%c0_140, %c0_141] : memref<80x128xf32, #tpu.memory_space<vmem>>, vector<80x128xf32>
    %cst_142 = arith.constant 0.000000e+00 : f32
    %117 = vector.broadcast %cst_142 : f32 to vector<80x128xf32>
    %118 = arith.maximumf %116, %117 : vector<80x128xf32>
    %119 = arith.truncf %118 : vector<80x128xf32> to vector<80x128xbf16>
    %c0_143 = arith.constant 0 : index
    %c0_144 = arith.constant 0 : index
    %c0_145 = arith.constant 0 : index
    %120 = vector.load %arg9[%c0_143, %c0_144, %c0_145] : memref<1x80x128xbf16, #tpu.memory_space<vmem>>, vector<1x80x128xbf16>
    %121 = vector.shape_cast %120 : vector<1x80x128xbf16> to vector<80x128xbf16>
    %122 = vector.shape_cast %119 : vector<80x128xbf16> to vector<1x80x128xbf16>
    tpu.vector_store %arg9[%c0_143, %c0_144, %c0_145], %122 {strides = array<i32>} : memref<1x80x128xbf16, #tpu.memory_space<vmem>>, vector<1x80x128xbf16>,
    return
  }
  func.func @transform_0(%arg0: i32) -> (i32, i32, i32) {
    %c0_i32 = arith.constant 0 : i32
    %c0_i32_0 = arith.constant 0 : i32
    %c0_i32_1 = arith.constant 0 : i32
    return %arg0, %c0_i32, %c0_i32_0 : i32, i32, i32
  }
  func.func @transform_1(%arg0: i32) -> (i32, i32, i32) {
    %c0_i32 = arith.constant 0 : i32
    %c0_i32_0 = arith.constant 0 : i32
    %c0_i32_1 = arith.constant 0 : i32
    return %arg0, %c0_i32, %c0_i32_0 : i32, i32, i32
  }
  func.func @transform_2(%arg0: i32) -> (i32, i32, i32) {
    %c0_i32 = arith.constant 0 : i32
    %c0_i32_0 = arith.constant 0 : i32
    %c0_i32_1 = arith.constant 0 : i32
    %c0_i32_2 = arith.constant 0 : i32
    return %c0_i32, %c0_i32_0, %c0_i32_1 : i32, i32, i32
  }
  func.func @transform_3(%arg0: i32) -> (i32, i32) {
    %c0_i32 = arith.constant 0 : i32
    %c0_i32_0 = arith.constant 0 : i32
    %c0_i32_1 = arith.constant 0 : i32
    return %c0_i32, %c0_i32_0 : i32, i32
  }
  func.func @transform_4(%arg0: i32) -> (i32, i32, i32) {
    %c0_i32 = arith.constant 0 : i32
    %c0_i32_0 = arith.constant 0 : i32
    %c0_i32_1 = arith.constant 0 : i32
    %c0_i32_2 = arith.constant 0 : i32
    return %c0_i32, %c0_i32_0, %c0_i32_1 : i32, i32, i32
  }
  func.func @transform_5(%arg0: i32) -> (i32, i32) {
    %c0_i32 = arith.constant 0 : i32
    %c0_i32_0 = arith.constant 0 : i32
    %c0_i32_1 = arith.constant 0 : i32
    return %c0_i32, %c0_i32_0 : i32, i32
  }
  func.func @transform_6(%arg0: i32) -> (i32, i32) {
    %c0_i32 = arith.constant 0 : i32
    %c0_i32_0 = arith.constant 0 : i32
    %c0_i32_1 = arith.constant 0 : i32
    return %c0_i32, %c0_i32_0 : i32, i32
  }
  func.func @transform_7(%arg0: i32) -> (i32, i32) {
    %c0_i32 = arith.constant 0 : i32
    %c0_i32_0 = arith.constant 0 : i32
    %c0_i32_1 = arith.constant 0 : i32
    return %c0_i32, %c0_i32_0 : i32, i32
  }
  func.func @transform_8(%arg0: i32) -> (i32, i32, i32) {
    %c0_i32 = arith.constant 0 : i32
    %c0_i32_0 = arith.constant 0 : i32
    %c0_i32_1 = arith.constant 0 : i32
    return %arg0, %c0_i32, %c0_i32_0 : i32, i32, i32
  }
}

</mosaic_0001>

<bundles_post_ra>
// kernel: tile.8
= control target key start
LH: loop header
LB: loop body
LE: loop exit
PB: predicated region body
PF: predicated region fallthrough
CT: control target
= control target key end

     0   :  { %s22_s0 = inlined_call_operand.vmem [shape: f32[10], index: 0, kind: input, shape index: {}]   ;;  %s23_s1 = inlined_call_operand.vmem [shape: f32[8,10], index: 1, kind: output, shape index: {}]  }
   0x1   :  { %v4_v0 = vld [vmem:[%s22_s0] ss:$0 sm:$0xff] }
   0x2   :  { %5 = vst [vmem:[%s23_s1] sm:$0xff] %v4_v0 }

// kernel: tile.0
= control target key start
LH: loop header
LB: loop body
LE: loop exit
PB: predicated region body
PF: predicated region fallthrough
CT: control target
= control target key end

     0   :  { %s140_s10 = smov 125   ;;  %vm3_vm0 = vcmask 7168   ;;  %s141_s11 = smov 127   ;;  %s295_s0 = inlined_call_operand.vmem [shape: f32[8,10], index: 0, kind: input, shape index: {}]   ;;  %s296_s1 = inlined_call_operand.vmem [shape: f32[80,1], index: 1, kind: output, shape index: {}]  }
   0x1   :  { %v29_v0 = vld.sshfl [vmem:[%s295_s0] sm:$0xff pattern:$0x62514703]   ;;  %s143_s18 = smov 124   ;;  %s144_s19 = smov 126  }
   0x2   :  { %v5_v1 = vld.sshfl [vmem:[%s295_s0] sm:$0xff pattern:$0x36251470]   ;;  %30 = vrot.lane.b32.xlu1 %v29_v0, %s140_s10  ;;  %s145_s20 = smov 122   ;;  %s146_s21 = smov 120  }
   0x3   :  { %6 = vrot.lane.b32.xlu0 %v5_v1, %s141_s11  ;;  %v2_v2 = vld [vmem:[%s295_s0] sm:$0xff]   ;;  %s147_s22 = smov 121   ;;  %s148_s23 = smov 119  }
   0x4   :  { %4 = vst.msk [vmem:[%s296_s1] ss:$10 sm:$0xff] %vm3_vm0, %v2_v2   ;;  %v41_v3 = vld.sshfl [vmem:[%s295_s0] sm:$0xff pattern:$0x25147036]   ;;  %s142_s0 = smov 123  }
   0x5   :  { %52 = vrot.lane.b32.xlu2 %v41_v3, %s142_s0 }
   0xa   :  { %42 = vrot.lane.b32.xlu1 %v41_v3, %s143_s18 }
   0xb   :  { %18 = vrot.lane.b32.xlu0 %v29_v0, %s144_s19 }
   0xd   :  { %62 = vrot.lane.b32.xlu2 %v41_v3, %s145_s20 }
  0x12   :  { %82 = vrot.lane.b32.xlu1 %v41_v3, %s146_s21 }
  0x13   :  { %72 = vrot.lane.b32.xlu0 %v41_v3, %s147_s22 }
  0x15   :  { %92 = vrot.lane.b32.xlu2 %v41_v3, %s148_s23 }
  0x5f   :  { %v53_v4 = vpop.permute.xlu2 %52  }
  0x60   :  { %116 = vst.msk [vmem:[%s296_s1 + $0x41] ss:$-30 sm:$0x7] %vm3_vm0, %v53_v4  }
  0x61   :  { %117 = vst.msk [vmem:[%s296_s1 + $0xa5] ss:$-30 sm:$0x38] %vm3_vm0, %v53_v4  }
  0x62   :  { %118 = vst.msk [vmem:[%s296_s1 + $0xeb] ss:$-30 sm:$0xc0] %vm3_vm0, %v53_v4  }
  0x67   :  { %v63_v5 = vpop.permute.xlu2 %62  }
  0x68   :  { %119 = vst.msk [vmem:[%s296_s1 + $0x42] ss:$-30 sm:$0x7] %vm3_vm0, %v63_v5  }
  0x69   :  { %120 = vst.msk [vmem:[%s296_s1 + $0xa6] ss:$-30 sm:$0x38] %vm3_vm0, %v63_v5  }
  0x6a   :  { %121 = vst.msk [vmem:[%s296_s1 + $0xec] ss:$-30 sm:$0xc0] %vm3_vm0, %v63_v5  }
  0x6f   :  { %v93_v6 = vpop.permute.xlu2 %92  }
  0x70   :  { %128 = vst.msk [vmem:[%s296_s1 + $0x45] ss:$-30 sm:$0x7] %vm3_vm0, %v93_v6  }
  0x71   :  { %129 = vst.msk [vmem:[%s296_s1 + $0xa9] ss:$-30 sm:$0x38] %vm3_vm0, %v93_v6  }
  0x72   :  { %130 = vst.msk [vmem:[%s296_s1 + $0xef] ss:$-30 sm:$0xc0] %vm3_vm0, %v93_v6  }
  0x74   :  { %v31_v7 = vpop.permute.xlu1 %30  }
  0x75   :  { %v7_v8 = vpop.permute.xlu0 %6   ;;  %109 = vst.msk [vmem:[%s296_s1 + $0x21] ss:$-30 sm:$0x3] %vm3_vm0, %v31_v7  }
  0x76   :  { %110 = vst.msk [vmem:[%s296_s1 + $0x85] ss:$-30 sm:$0x1c] %vm3_vm0, %v31_v7  }
  0x77   :  { %111 = vst.msk [vmem:[%s296_s1 + $0xcb] ss:$-30 sm:$0x60] %vm3_vm0, %v31_v7  }
  0x78   :  { %112 = vst.msk [vmem:[%s296_s1 + $0x38] sm:$0x80] %vm3_vm0, %v31_v7  }
  0x79   :  { %101 = vst.msk [vmem:[%s296_s1 + $0x1] ss:$70 sm:$0x3] %vm3_vm0, %v7_v8  }
  0x7a   :  { %102 = vst.msk [vmem:[%s296_s1 + $0x65] ss:$-30 sm:$0xc] %vm3_vm0, %v7_v8  }
  0x7b   :  { %103 = vst.msk [vmem:[%s296_s1 + $0xab] ss:$-30 sm:$0x30] %vm3_vm0, %v7_v8  }
  0x7c   :  { %104 = vst.msk [vmem:[%s296_s1 + $0xf1] ss:$-30 sm:$0xc0] %vm3_vm0, %v7_v8   ;;  %v43_v9 = vpop.permute.xlu1 %42  }
  0x7d   :  { %v19_v10 = vpop.permute.xlu0 %18   ;;  %113 = vst.msk [vmem:[%s296_s1 + $0x40] ss:$-30 sm:$0x7] %vm3_vm0, %v43_v9  }
  0x7e   :  { %114 = vst.msk [vmem:[%s296_s1 + $0xa4] ss:$-30 sm:$0x38] %vm3_vm0, %v43_v9  }
  0x7f   :  { %115 = vst.msk [vmem:[%s296_s1 + $0xea] ss:$-30 sm:$0xc0] %vm3_vm0, %v43_v9  }
  0x80   :  { %105 = vst.msk [vmem:[%s296_s1 + $0x20] ss:$-30 sm:$0x3] %vm3_vm0, %v19_v10  }
  0x81   :  { %106 = vst.msk [vmem:[%s296_s1 + $0x84] ss:$-30 sm:$0x1c] %vm3_vm0, %v19_v10  }
  0x82   :  { %107 = vst.msk [vmem:[%s296_s1 + $0xca] ss:$-30 sm:$0x60] %vm3_vm0, %v19_v10  }
  0x83   :  { %108 = vst.msk [vmem:[%s296_s1 + $0x37] sm:$0x80] %vm3_vm0, %v19_v10  }
  0x84   :  { %v83_v11 = vpop.permute.xlu1 %82  }
  0x85   :  { %v73_v12 = vpop.permute.xlu0 %72   ;;  %125 = vst.msk [vmem:[%s296_s1 + $0x44] ss:$-30 sm:$0x7] %vm3_vm0, %v83_v11  }
  0x86   :  { %126 = vst.msk [vmem:[%s296_s1 + $0xa8] ss:$-30 sm:$0x38] %vm3_vm0, %v83_v11  }
  0x87   :  { %127 = vst.msk [vmem:[%s296_s1 + $0xee] ss:$-30 sm:$0xc0] %vm3_vm0, %v83_v11  }
  0x88   :  { %122 = vst.msk [vmem:[%s296_s1 + $0x43] ss:$-30 sm:$0x7] %vm3_vm0, %v73_v12  }
  0x89   :  { %123 = vst.msk [vmem:[%s296_s1 + $0xa7] ss:$-30 sm:$0x38] %vm3_vm0, %v73_v12  }
  0x8a   :  { %124 = vst.msk [vmem:[%s296_s1 + $0xed] ss:$-30 sm:$0xc0] %vm3_vm0, %v73_v12  }

// kernel: basic_block_forward.1
= control target key start
LH: loop header
LB: loop body
LE: loop exit
PB: predicated region body
PF: predicated region fallthrough
CT: control target
= control target key end

     0   :  { %s4148_s27 = smov 0   ;;  %s4791_s0 = inlined_call_operand.vmem [shape: bf16[2,96,16], index: 0, kind: input, shape index: {}]   ;;  %s4792_s1 = inlined_call_operand.vmem [shape: bf16[2,80,4], index: 1, kind: input, shape index: {}]   ;;  %s4793_s2 = inlined_call_operand.vmem [shape: bf16[4,16,128], index: 2, kind: input, shape index: {}]   ;;  %s4794_s3 = inlined_call_operand.vmem [shape: f32[1,128], index: 3, kind: input, shape index: {}]   ;;  %s4795_s4 = inlined_call_operand.vmem [shape: bf16[9,128,128], index: 4, kind: input, shape index: {}]   ;;  %s4796_s5 = inlined_call_operand.vmem [shape: f32[1,128], index: 5, kind: input, shape index: {}]   ;;  %s4797_s6 = inlined_call_operand.vmem [shape: bf16[4,128], index: 6, kind: input, shape index: {}]   ;;  %s4798_s7 = inlined_call_operand.vmem [shape: f32[80,1], index: 7, kind: input, shape index: {}]   ;;  %s4799_s8 = inlined_call_operand.vmem [shape: bf16[2,80,128], index: 8, kind: output, shape index: {}]  }
   0x1 LB: > { %s3148_s28 = sadd.s32 4294967295, %s4100_s27   ;;  %p3152_p0 = scmp.ge.s32.totalorder %s4100_s27, 1  ;;  %s4100_s27 = sphi %s4148_s27, %s18_s27  }
   0x2   : > { %p272_p1 = scmp.lt.s32.totalorder %s4100_s27, 3 }
   0x4   : > { %p273_p2 = pnand %p3152_p0, %p272_p1 }
   0x5   : > { %p311_p3 = scmp.lt.s32.totalorder (!%p273_p2), %s3148_s28, 1 }
   0x6   : > { %276 = sbr.rel (%p273_p2) target bundleno = 593 (0x251), region = 52 }
   0xb   : > { %v3906_v0 = vld [vmem:[%s4793_s2] sm:$0xff]  ;;  %v3912_v1 = vld [vmem:[%s4793_s2 + $0x8] sm:$0xff]  ;;  %v3924_v2 = vld [vmem:[%s4793_s2 + $0x18] sm:$0xff]  ;;  %s4807_s28 = smov (!%p311_p3, %s3148_s28), 1  ;;  %vm370_vm0 = vcmask 130048   ;;  %v4102_v33 = vmov 0  }
   0xc   : > { %v3918_v3 = vld [vmem:[%s4793_s2 + $0x10] sm:$0xff]  ;;  %393 = vmatpush.bf16.msra.mxu0 %v3906_v0  ;;  %4076 = vmatpush.bf16.msra.mxu2 %v3906_v0  ;;  %s4078_s15 = smul.u32 48, %s4807_s28  ;;  %vm482_vm1 = vsmask.f32 7424  ;;  %v956_v31 = vld [vmem:[%s4798_s7] sm:$0xff]  ;;  %v957_v40 = vld [vmem:[%s4798_s7 + $0x8] sm:$0xff] }
   0xd   : > { %4077 = vmatpush.bf16.msra.mxu3 %v3912_v1  ;;  %555 = vmatpush.bf16.msra.mxu1 %v3912_v1  ;;  %1036 = vst [vmem:[#allocation2] sm:$0xf] %v4102_v33  ;;  %vm654_vm2 = vcmask 1046528   ;;  %v962_v53 = vld [vmem:[%s4798_s7 + $0x30] sm:$0xff]  ;;  %v965_v61 = vld [vmem:[%s4798_s7 + $0x48] sm:$0xff]  ;;  %vm1037_vm4 = vcmask 1041408  }
   0xe   : > { %s4174_s18 = scalar_lea.vmem %s4791_s0, %s4078_s15  ;;  %4089 = vset.pattern.permute.xlu0 %v4102_v33  ;;  %1049 = vst [vmem:[#allocation2 + $0x30] sm:$0xf] %v4102_v33  ;;  %4090 = vset.pattern.permute.xlu1 %v4102_v33  ;;  %v958_v60 = vld [vmem:[%s4798_s7 + $0x10] sm:$0xff]  ;;  %vm793_vm3 = vsmask.f32 6400  ;;  %vm1217_vm7 = vcmask 31744  }
   0xf   : > { %v3901_v4 = vld [vmem:[%s4174_s18] sm:$0xff]  ;;  %v3904_v5 = vld [vmem:[%s4174_s18 + $0x18] sm:$0xff]  ;;  %v3909_v6 = vld [vmem:[%s4174_s18 + $0x10] sm:$0xff]  ;;  %968 = vperm.xlu0 %4089, %v956_v31   ;;  %4091 = vset.pattern.permute.xlu2 %v4102_v33  ;;  %vm1038_vm5 = vsmask.f32 1280  ;;  %vm1043_vm8 = vcmask 1043457  }
  0x10   : > { %694 = vmatpush.bf16.msrb.mxu2 %v3918_v3  ;;  %v3910_v7 = vld [vmem:[%s4174_s18 + $0x18] sm:$0xff]  ;;  %3180 = vmatmul.msk.bf16.vlgmr.msra.gmra.mxu0 %vm370_vm0, %v3901_v4  ;;  %v499_v8 = vshll.u32 %v3909_v6, 16  ;;  %v503_v9 = vshrl.u32 %v3909_v6, 16  ;;  %v3911_v15 = vld [vmem:[%s4174_s18 + $0x20] sm:$0xff]  ;;  %v3908_v17 = vld [vmem:[%s4174_s18 + $0x8] sm:$0xff]  ;;  %vm2326_vm13 = vcmask 1045504  }
  0x11   : > { %875 = vmatpush.bf16.msrb.mxu3 %v3924_v2  ;;  %3183 = vmatmul.msk.bf16.vlgmr.msra.gmra.mxu2 %vm370_vm0, %v3904_v5  ;;  %v507_v10 = vshll.u32 %v3910_v7, 16  ;;  %v3907_v16 = vld [vmem:[%s4174_s18] sm:$0xff]  ;;  %v511_v19 = vshrl.u32 %v3910_v7, 16  ;;  %v3902_v20 = vld [vmem:[%s4174_s18 + $0x8] sm:$0xff]  ;;  %v515_v22 = vshll.u32 %v3911_v15, 16  ;;  %v491_v25 = vshll.u32 %v3908_v17, 16  ;;  %vm4278_vm6 = vmand %vm1037_vm4, %vm1038_vm5 }
  0x12   : > { %v501_v11 = vrot.slane %v499_v8, 1  ;;  %v486_v18 = vshll.u32 %v3907_v16, 16  ;;  %v3905_v21 = vld [vmem:[%s4174_s18 + $0x20] sm:$0xff]  ;;  %v484_v23 = vshrl.u32 %v3907_v16, 16  ;;  %v450_v32 = vld [vmem:[%s4174_s18 + $0x28] sm:$0x1]  ;;  %978 = vperm.xlu1 %4090, %v958_v60  }
  0x13   : > { %v509_v12 = vrot.slane %v507_v10, 1  ;;  %v493_v27 = vrot.slane %v491_v25, 1  ;;  %v517_v29 = vrot.slane %v515_v22, 1  ;;  %v3220_v34 = vld [vmem:[%s4174_s18 + $0x4] sm:$0xe]  ;;  %v475_v37 = vunpack.c.l.b16 %v450_v32  ;;  %v3914_v38 = vld [vmem:[%s4174_s18 + $0xc] sm:$0xff] }
  0x14   : > { %v505_v13 = vor.u32 %v503_v9, %v501_v11  ;;  %v488_v24 = vrot.slane %v486_v18, 1  ;;  %v3913_v35 = vld [vmem:[%s4174_s18 + $0x4] sm:$0xf0]  ;;  %v656_v43 = vrot.slane %v3914_v38, 1  ;;  %v3903_v44 = vld [vmem:[%s4174_s18 + $0x10] sm:$0xff]  ;;  %v519_v45 = vshrl.u32 %v3911_v15, 16 }
  0x15   : > { %v513_v28 = vor.u32 %v511_v19, %v509_v12  ;;  %v3221_v39 = vor.u32 %v3913_v35, %v3220_v34  ;;  %v481_v41 = vpack.c.b16 %v475_v37, %v475_v37  ;;  %v495_v47 = vshrl.u32 %v3908_v17, 16  ;;  %v3251_v54 = vld [vmem:[%s4174_s18 + $0x4] sm:$0xe]  ;;  %v3919_v55 = vld [vmem:[%s4174_s18 + $0x4] sm:$0xf0]  ;;  %v3920_v57 = vld [vmem:[%s4174_s18 + $0xc] sm:$0xff] }
  0x16   : > { %v510_v14 = vsel %vm482_vm1, %v505_v13, %v509_v12  ;;  %v489_v26 = vor.u32 %v488_v24, %v484_v23  ;;  %v521_v50 = vor.u32 %v519_v45, %v517_v29  ;;  %v3252_v58 = vor.u32 %v3919_v55, %v3251_v54  ;;  %v3915_v59 = vld [vmem:[%s4174_s18 + $0x14] sm:$0xff]  ;;  %v3916_v13 = vld [vmem:[%s4174_s18 + $0x1c] sm:$0xff]  ;;  %v3917_v24 = vld [vmem:[%s4174_s18 + $0x24] sm:$0xff] }
  0x17   : > { %3213 = vmatmul.msk.bf16.vlgmr.msra.gmra.mxu3 %vm370_vm0, %v510_v14  ;;  %v518_v36 = vsel %vm482_vm1, %v513_v28, %v517_v29  ;;  %v655_v42 = vrot.slane %v3221_v39, 1  ;;  %973 = vperm.xlu0 %4089, %v957_v40   ;;  %v523_v46 = vshll.u32 %v481_v41, 16  ;;  %v497_v49 = vor.u32 %v495_v47, %v493_v27  ;;  %v959_v10 = vld [vmem:[%s4798_s7 + $0x18] sm:$0xff]  ;;  %v960_v25 = vld [vmem:[%s4798_s7 + $0x20] sm:$0xff]  ;;  %v622_v32 = vld [vmem:[%s4174_s18 + $0x2c] sm:$0x1] }
  0x18   : > { %v494_v30 = vsel %vm482_vm1, %v489_v26, %v493_v27  ;;  %v795_v62 = vshrl.u32 %v3252_v58, 16  ;;  %v798_v63 = vshll.u32 %v3252_v58, 16  ;;  %v803_v0 = vshrl.u32 %v3920_v57, 16  ;;  %v3921_v12 = vld [vmem:[%s4174_s18 + $0x14] sm:$0xff]  ;;  %v3922_v23 = vld [vmem:[%s4174_s18 + $0x1c] sm:$0xff]  ;;  %988 = vperm.xlu2 %4091, %v960_v25   ;;  %v961_v45 = vld [vmem:[%s4798_s7 + $0x28] sm:$0xff] }
  0x19   : > { %3211 = vmatmul.msk.bf16.vlgmr.msra.gmra.mxu1 %vm370_vm0, %v494_v30  ;;  %v657_v48 = vsel %vm654_vm2, %v655_v42, %v656_v43  ;;  %v525_v51 = vrot.slane %v523_v46, 1  ;;  %v502_v52 = vsel %vm482_vm1, %v497_v49, %v501_v11  ;;  %v806_v1 = vshll.u32 %v3920_v57, 16  ;;  %v963_v14 = vld [vmem:[%s4798_s7 + $0x38] sm:$0xff]  ;;  %v1187_v57 = vld [vmem:[%s4797_s6] sm:$0x3]  ;;  %v3967_v25 = vld [vmem:[%s4795_s4 + $0xb0] sm:$0xff] }
  0x1a   : > { %v658_v2 = vrot.slane %v3915_v59, 1  ;;  %v797_v3 = vrot.slane %v795_v62, 1  ;;  %v800_v4 = vrot.slane %v798_v63, 2  ;;  %v805_v5 = vrot.slane %v803_v0, 1  ;;  %983 = vperm.xlu1 %4090, %v959_v10   ;;  %v1040_v59 = vld [vmem:[#allocation2 + $0x4] sm:$0x3] }
  0x1b   : > { %v526_v56 = vsel %vm482_vm1, %v521_v50, %v525_v51  ;;  %v808_v6 = vrot.slane %v806_v1, 2  ;;  %v812_v15 = vshrl.u32 %v3921_v12, 16  ;;  %v815_v16 = vshll.u32 %v3921_v12, 16  ;;  %v964_v50 = vld [vmem:[%s4798_s7 + $0x40] sm:$0xff]  ;;  %v3940_v10 = vld [vmem:[%s4795_s4 + $0x28] sm:$0xff] }
  0x1c   : > { %v659_v7 = vsel %vm654_vm2, %v656_v43, %v658_v2  ;;  %v801_v8 = vor.u32 %v800_v4, %v797_v3  ;;  %v660_v17 = vrot.slane %v3916_v13, 1  ;;  %v821_v26 = vshrl.u32 %v3922_v23, 16  ;;  %v3939_v12 = vld [vmem:[%s4795_s4 + $0x20] sm:$0xff] }
  0x1d   : > { %v809_v9 = vor.u32 %v808_v6, %v805_v5  ;;  %v814_v18 = vrot.slane %v812_v15, 1  ;;  %v817_v19 = vrot.slane %v815_v16, 2  ;;  %v824_v27 = vshll.u32 %v3922_v23, 16  ;;  %v3942_v5 = vld [vmem:[%s4795_s4 + $0x38] sm:$0xff]  ;;  %v3941_v6 = vld [vmem:[%s4795_s4 + $0x30] sm:$0xff] }
  0x1e   : > { %v662_v28 = vrot.slane %v3917_v24, 1  ;;  %v823_v29 = vrot.slane %v821_v26, 1  ;;  %v647_v34 = vunpack.c.l.b16 %v622_v32  ;;  %v1235_v58 = vsel %vm1037_vm4, %v1187_v57, 0  ;;  %1395 = vmatpush.bf16.msrb.mxu1 %v3942_v5  ;;  %v3981_v32 = vld [vmem:[%s4795_s4 + $0xf8] sm:$0xff] }
  0x1f   : > { %998 = vperm.xlu0 %4089, %v962_v53   ;;  %v810_v11 = vsel %vm793_vm3, %v801_v8, %v809_v9  ;;  %v826_v30 = vrot.slane %v824_v27, 2  ;;  %1244 = vmatpush.bf16.msrb.mxu0 %v1235_v58  ;;  %v1041_v62 = vsel %vm4278_vm6, 0, %v1040_v59  ;;  %vm1044_vm9 = vsmask.f32 7942  ;;  %v3936_v27 = vld [vmem:[%s4795_s4 + $0x8] sm:$0xff] }
  0x20   : > { %3181 = vmatmul.msk.bf16.gmra.mxu0 %vm370_vm0, %v3902_v20  ;;  %v661_v20 = vsel %vm654_vm2, %v658_v2, %v660_v17  ;;  %v663_v31 = vsel %vm654_vm2, %v660_v17, %v662_v28  ;;  %v653_v37 = vpack.c.b16 %v647_v34, %v647_v34  ;;  %993 = vperm.xlu2 %4091, %v961_v45   ;;  %vm4314_vm10 = vmand %vm1043_vm8, %vm1044_vm9  ;;  %v3938_v17 = vld [vmem:[%s4795_s4 + $0x18] sm:$0xff]  ;;  %v3953_v34 = vld [vmem:[%s4795_s4 + $0x68] sm:$0xff]  ;;  %vm1050_vm11 = vsmask.f32 5392 }
  0x21   : > { %3184 = vmatmul.msk.bf16.gmra.mxu2 %vm370_vm0, %v3905_v21  ;;  %v818_v21 = vor.u32 %v817_v19, %v814_v18  ;;  %v827_v33 = vor.u32 %v826_v30, %v823_v29  ;;  %1042 = vst [vmem:[#allocation2 + $0x4] sm:$0x3] %v1041_v62  ;;  %v3968_v19 = vld [vmem:[%s4795_s4 + $0xb8] sm:$0xff]  ;;  %v3962_v59 = vld [vmem:[%s4795_s4 + $0x88] sm:$0xff]  ;;  %vm4430_vm12 = vmor %vm1038_vm5, %vm1050_vm11  ;;  %vm2695_vm14 = vsmask.f32 5376 }
  0x22   : > { %1003 = vperm.xlu1 %4090, %v963_v14   ;;  %v664_v40 = vrot.slane %v653_v37, 1  ;;  %1396 = vmatpush.bf16.msrb.mxu1 %v3941_v6  ;;  %v1046_v14 = vld [vmem:[#allocation2 + $0x2c] sm:$0xe]  ;;  %v3965_v37 = vld [vmem:[%s4795_s4 + $0xa0] sm:$0xff]  ;;  %vm2922_vm15 = vcmask 1044480  }
  0x23   : > { %v819_v22 = vsel %vm793_vm3, %v809_v9, %v818_v21  ;;  %v828_v35 = vsel %vm793_vm3, %v818_v21, %v827_v33  ;;  %v1047_v18 = vsel %vm4314_vm10, 0, %v1046_v14  ;;  %v3955_v21 = vld [vmem:[%s4795_s4 + $0x78] sm:$0xff]  ;;  %1796 = vmatpush.bf16.msra.mxu3 %v3968_v19  ;;  %1980 = vmatpush.bf16.msra.mxu0 %v3981_v32  ;;  %v3976_v14 = vld [vmem:[%s4795_s4 + $0xd0] sm:$0xff] }
  0x24   : > { %v665_v43 = vsel %vm654_vm2, %v662_v28, %v664_v40  ;;  %1048 = vst [vmem:[#allocation2 + $0x2c] sm:$0xe] %v1047_v18  ;;  %1612 = vmatpush.bf16.msra.mxu2 %v3955_v21  ;;  %v3954_v28 = vld [vmem:[%s4795_s4 + $0x70] sm:$0xff]  ;;  %v3952_v40 = vld [vmem:[%s4795_s4 + $0x60] sm:$0xff] }
  0x26   : > { %1397 = vmatpush.bf16.msrb.mxu1 %v3940_v10 }
  0x27   : > { %3214 = vmatmul.msk.bf16.gmra.mxu3 %vm370_vm0, %v518_v36  ;;  %1013 = vperm.xlu0 %4089, %v965_v61   ;;  %v3923_v36 = vld [vmem:[%s4174_s18 + $0x24] sm:$0xff] }
  0x28   : > { %v830_v38 = vshrl.u32 %v3923_v36, 16  ;;  %v833_v39 = vshll.u32 %v3923_v36, 16  ;;  %1008 = vperm.xlu2 %4091, %v964_v50   ;;  %1797 = vmatpush.bf16.msra.mxu3 %v3967_v25  ;;  %v3963_v50 = vld [vmem:[%s4795_s4 + $0x90] sm:$0xff] }
  0x29   : > { %3212 = vmatmul.msk.bf16.gmra.mxu1 %vm370_vm0, %v502_v52  ;;  %1613 = vmatpush.bf16.msra.mxu2 %v3954_v28 }
  0x2a   : > { %v832_v41 = vrot.slane %v830_v38, 1  ;;  %v835_v42 = vrot.slane %v833_v39, 2  ;;  %1398 = vmatpush.bf16.msrb.mxu1 %v3939_v12  ;;  %v3980_v38 = vld [vmem:[%s4795_s4 + $0xf0] sm:$0xff]  ;;  %v3961_v12 = vld [vmem:[%s4795_s4 + $0x80] sm:$0xff] }
  0x2b   : > { %1981 = vmatpush.bf16.msra.mxu0 %v3980_v38 }
  0x2c   : > { %v836_v46 = vor.u32 %v835_v42, %v832_v41 }
  0x2d   : > { %1614 = vmatpush.bf16.msra.mxu2 %v3953_v34 }
  0x2e   : > { %1399 = vmatpush.bf16.msrb.mxu1 %v3938_v17 }
  0x30   : > { %3182 = vmatmul.msk.bf16.gmra.mxu0 %vm370_vm0, %v3903_v44  ;;  %v761_v44 = vld [vmem:[%s4174_s18 + $0x2c] sm:$0x3]  ;;  %s4079_s18 = smul.u32 40, %s4807_s28 }
  0x31   : > { %3242 = vmatmul.msk.bf16.vlgmr.msrb.gmra.mxu2 %vm370_vm0, %v657_v48  ;;  %v786_v47 = vunpack.c.l.b16 %v761_v44  ;;  %v837_v48 = vsel %vm793_vm3, %v827_v33, %v836_v46  ;;  %v3935_v33 = vld [vmem:[%s4795_s4] sm:$0xff]  ;;  %v3979_v44 = vld [vmem:[%s4795_s4 + $0xe8] sm:$0xff] }
  0x32   : > { %s4275_s24 = scalar_lea.vmem %s4792_s1, %s4079_s18  ;;  %1615 = vmatpush.bf16.msra.mxu2 %v3952_v40  ;;  %1982 = vmatpush.bf16.msra.mxu0 %v3979_v44  ;;  %v3974_v40 = vld [vmem:[%s4795_s4 + $0xc0] sm:$0xff]  ;;  %s4777_s26 = scalar_lea.vmem %s4799_s8, %s4079_s18 }
  0x33   : > { %v792_v49 = vpack.c.b16 %v786_v47, %v786_v47  ;;  %v3925_v61 = vld [vmem:[%s4275_s24] sm:$0xff]  ;;  %v3926_v2 = vld [vmem:[%s4275_s24 + $0x8] sm:$0xff]  ;;  %v3928_v30 = vld [vmem:[%s4275_s24 + $0x18] sm:$0xff] }
  0x34   : > { %v3951_v47 = vld [vmem:[%s4795_s4 + $0x58] sm:$0xff]  ;;  %v3929_v57 = vld [vmem:[%s4275_s24 + $0x20] sm:$0xff] }
  0x35   : > { %v839_v51 = vshrl.u32 %v792_v49, 16  ;;  %v842_v52 = vshll.u32 %v792_v49, 16 }
  0x36   : > { %1616 = vmatpush.bf16.msra.mxu2 %v3951_v47 }
  0x37   : > { %3215 = vmatmul.msk.bf16.gmra.mxu3 %vm370_vm0, %v526_v56  ;;  %v841_v53 = vrot.slane %v839_v51, 1  ;;  %v844_v54 = vrot.slane %v842_v52, 2  ;;  %v3978_v51 = vld [vmem:[%s4795_s4 + $0xe0] sm:$0xff] }
  0x38   : > { %1983 = vmatpush.bf16.msra.mxu0 %v3978_v51 }
  0x39   : > { %v845_v55 = vor.u32 %v844_v54, %v841_v53  ;;  %v3950_v54 = vld [vmem:[%s4795_s4 + $0x50] sm:$0xff] }
  0x3a   : > { %1617 = vmatpush.bf16.msra.mxu2 %v3950_v54 }
  0x3b   : > { %v846_v56 = vsel %vm793_vm3, %v836_v46, %v845_v55  ;;  %v4377_v46 = vld [vmem:[%s4794_s3] ss:$0 sm:$0xff] }
  0x40   : > { %3298 = vmatmul.msk.bf16.vlgmr.msrb.gmra.mxu0 %vm1217_vm7, %v3925_v61  ;;  %v3977_v61 = vld [vmem:[%s4795_s4 + $0xd8] sm:$0xff] }
  0x41   : > { %3243 = vmatmul.msk.bf16.gmra.mxu2 %vm370_vm0, %v659_v7  ;;  %1984 = vmatpush.bf16.msra.mxu0 %v3977_v61 }
  0x45   : > { %1985 = vmatpush.bf16.msra.mxu0 %v3976_v14 }
  0x47   : > { %3273 = vmatmul.msk.bf16.vlgmr.msrb.gmra.mxu3 %vm370_vm0, %v810_v11  ;;  %v3927_v11 = vld [vmem:[%s4275_s24 + $0x10] sm:$0xff] }
  0x50   : > { %3299 = vmatmul.msk.bf16.gmra.mxu0 %vm1217_vm7, %v3926_v2 }
  0x51   : > { %3244 = vmatmul.msk.bf16.gmra.mxu2 %vm370_vm0, %v661_v20  ;;  %v3937_v20 = vld [vmem:[%s4795_s4 + $0x10] sm:$0xff] }
  0x52   : > { %1400 = vmatpush.bf16.msrb.mxu1 %v3937_v20  ;;  %v3948_v20 = vld [vmem:[%s4795_s4 + $0x40] sm:$0xff] }
  0x56   : > { %1401 = vmatpush.bf16.msrb.mxu1 %v3936_v27 }
  0x57   : > { %3274 = vmatmul.msk.bf16.gmra.mxu3 %vm370_vm0, %v819_v22 }
  0x5a   : > { %1402 = vmatpush.bf16.msrb.mxu1 %v3935_v33 }
  0x60   : > { %3300 = vmatmul.msk.bf16.gmra.mxu0 %vm1217_vm7, %v3927_v11 }
  0x61   : > { %3245 = vmatmul.msk.bf16.gmra.mxu2 %vm370_vm0, %v663_v31  ;;  %v3966_v31 = vld [vmem:[%s4795_s4 + $0xa8] sm:$0xff] }
  0x62   : > { %1798 = vmatpush.bf16.msra.mxu3 %v3966_v31 }
  0x66   : > { %1799 = vmatpush.bf16.msra.mxu3 %v3965_v37 }
  0x67   : > { %3275 = vmatmul.msk.bf16.gmra.mxu3 %vm370_vm0, %v828_v35 }
  0x70   : > { %3301 = vmatmul.msk.bf16.gmra.mxu0 %vm1217_vm7, %v3928_v30 }
  0x71   : > { %3246 = vmatmul.msk.bf16.gmra.mxu2 %vm370_vm0, %v665_v43  ;;  %v3964_v43 = vld [vmem:[%s4795_s4 + $0x98] sm:$0xff] }
  0x72   : > { %1800 = vmatpush.bf16.msra.mxu3 %v3964_v43 }
  0x76   : > { %1801 = vmatpush.bf16.msra.mxu3 %v3963_v50 }
  0x77   : > { %3276 = vmatmul.msk.bf16.gmra.mxu3 %vm370_vm0, %v837_v48 }
  0x7a   : > { %1802 = vmatpush.bf16.msra.mxu3 %v3962_v59 }
  0x7e   : > { %1803 = vmatpush.bf16.msra.mxu3 %v3961_v12 }
  0x80   : > { %3302 = vmatmul.msk.bf16.gmra.mxu0 %vm1217_vm7, %v3929_v57 }
  0x84   : > { %v979_v16 = vpop.permute.xlu1 %978 }
  0x87   : > { %3277 = vmatmul.msk.bf16.gmra.mxu3 %vm370_vm0, %v846_v56  ;;  %v969_v56 = vpop.permute.xlu0 %968 }
  0x8d   : > { %v395_v22 = vpop.f32.mrf.mxu0 }
  0x8f   : > { %v974_v28 = vpop.permute.xlu0 %973 }
  0x94   : > { %v410_v63 = vpop.f32.mrf.mxu2 }
  0x95   : > { %v397_v39 = vpop.f32.mrf.mxu0 }
  0x96   : > { %v557_v26 = vpop.f32.mrf.mxu1 }
  0x97   : > { %v582_v36 = vadd.f32 %v557_v26, %v395_v22  ;;  %v3975_v26 = vld [vmem:[%s4795_s4 + $0xc8] sm:$0xff] }
  0x98   : > { %1986 = vmatpush.bf16.msra.mxu0 %v3975_v26 }
  0x9a   : > { %v4286_v0 = vpop.f32.mrf.mxu3 }
  0x9c   : > { %v4288_v1 = vpop.f32.mrf.mxu2  ;;  %1987 = vmatpush.bf16.msra.mxu0 %v3974_v40 }
  0x9d   : > { %v400_v55 = vpop.f32.mrf.mxu0 }
  0x9e   : > { %v559_v41 = vpop.f32.mrf.mxu1 }
  0x9f   : > { %v583_v52 = vadd.f32 %v559_v41, %v397_v39  ;;  %v3993_v39 = vld [vmem:[%s4795_s4 + $0x130] sm:$0xff] }
  0xa2   : > { %v4292_v3 = vpop.f32.mrf.mxu3 }
  0xa4   : > { %v415_v4 = vpop.f32.mrf.mxu2 }
  0xa5   : > { %v402_v27 = vpop.f32.mrf.mxu0 }
  0xa6   : > { %v562_v62 = vpop.f32.mrf.mxu1 }
  0xa7   : > { %v584_v10 = vadd.f32 %v562_v62, %v400_v55 }
  0xaa   : > { %v572_v7 = vpop.f32.mrf.mxu3 }
  0xab   : > { %v4300_v8 = vadd.f32 %v572_v7, %v410_v63 }
  0xac   : > { %v4302_v9 = vpop.f32.mrf.mxu2 }
  0xad   : > { %v405_v54 = vpop.f32.mrf.mxu0 }
  0xae   : > { %v564_v32 = vpop.f32.mrf.mxu1 }
  0xaf   : > { %v585_v43 = vadd.f32 %v564_v32, %v402_v27  ;;  %v3441_v27 = vld [vmem:[#allocation2] sm:$0xe] }
  0xb2   : > { %v4312_v13 = vpop.f32.mrf.mxu3 }
  0xb4   : > { %v696_v15 = vpop.f32.mrf.mxu2 }
  0xb5   : > { %v721_v42 = vadd.f32 %v696_v15, %v582_v36  ;;  %v3994_v15 = vld [vmem:[%s4795_s4 + $0x138] sm:$0xff] }
  0xb6   : > { %2206 = vmatpush.bf16.msra.mxu1 %v3994_v15 }
  0xba   : > { %v577_v23 = vpop.f32.mrf.mxu3  ;;  %2207 = vmatpush.bf16.msra.mxu1 %v3993_v39 }
  0xbb   : > { %v4332_v24 = vadd.f32 %v577_v23, %v415_v4  ;;  %v3949_v4 = vld [vmem:[%s4795_s4 + $0x48] sm:$0xff] }
  0xbc   : > { %v698_v29 = vpop.f32.mrf.mxu2  ;;  %1618 = vmatpush.bf16.msra.mxu2 %v3949_v4  ;;  %v586_v4 = vadd.f32 %v4286_v0, %v405_v54  ;;  %v3992_v0 = vld [vmem:[%s4795_s4 + $0x128] sm:$0xff] }
  0xbd   : > { %v722_v2 = vadd.f32 %v698_v29, %v583_v52  ;;  %v1162_v29 = vld [vmem:[#allocation2 + $0x4] sm:$0xe] }
  0xbe   : > { %2208 = vmatpush.bf16.msra.mxu1 %v3992_v0 }
  0xc0   : > { %1619 = vmatpush.bf16.msra.mxu2 %v3948_v20 }
  0xc2   : > { %v4357_v35 = vpop.f32.mrf.mxu3 }
  0xc4   : > { %v701_v45 = vpop.f32.mrf.mxu2 }
  0xc5   : > { %v723_v25 = vadd.f32 %v701_v45, %v584_v10  ;;  %v984_v10 = vpop.permute.xlu1 %983 }
  0xca   : > { %v877_v48 = vpop.f32.mrf.mxu3 }
  0xcb   : > { %v902_v49 = vadd.f32 %v877_v48, %v721_v42 }
  0xcc   : > { %v703_v5 = vpop.f32.mrf.mxu2 }
  0xcd   : > { %v936_v53 = vadd.f32 %v4377_v46, %v902_v49 }
  0xcf   : > { %v946_v58 = vmax.f32 %v936_v53, 0.0  ;;  %v724_v53 = vadd.f32 %v703_v5, %v585_v43 }
  0xd1   : > { %v1016_v63 = vmul.f32 %v969_v56, %v946_v58 }
  0xd2   : > { %v879_v6 = vpop.f32.mrf.mxu3 }
  0xd3   : > { %v1026_v7 = vpack.c.bf16 %v1016_v63, %v1016_v63  ;;  %v903_v11 = vadd.f32 %v879_v6, %v722_v2 }
  0xd4   : > { %v706_v38 = vpop.f32.mrf.mxu2 }
  0xd5   : > { %v1053_v17 = vshrl.u32 %v1026_v7, 16  ;;  %v1056_v18 = vshll.u32 %v1026_v7, 16  ;;  %v937_v19 = vadd.f32 %v4377_v46, %v903_v11  ;;  %v725_v12 = vadd.f32 %v706_v38, %v586_v4 }
  0xd7   : > { %v1055_v21 = vrot.slane %v1053_v17, 6  ;;  %v1058_v22 = vrot.slane %v1056_v18, 7  ;;  %v947_v23 = vmax.f32 %v937_v19, 0.0 }
  0xd9   : > { %v1059_v30 = vor.u32 %v1058_v22, %v1055_v21  ;;  %v1017_v31 = vmul.f32 %v974_v28, %v947_v23  ;;  %v407_v21 = vpop.f32.mrf.mxu0 }
  0xda   : > { %v882_v33 = vpop.f32.mrf.mxu3 }
  0xdb   : > { %v1163_v34 = vsel %vm4314_vm10, %v1059_v30, %v1162_v29  ;;  %v1027_v36 = vpack.c.bf16 %v1017_v31, %v1017_v31  ;;  %v904_v37 = vadd.f32 %v882_v33, %v723_v25  ;;  %v1060_v50 = vrot.slane %v1059_v30, 4  ;;  %v989_v29 = vpop.permute.xlu2 %988 }
  0xdc   : > { %1164 = vst [vmem:[#allocation2 + $0x4] sm:$0xe] %v1163_v34  ;;  %v708_v2 = vpop.f32.mrf.mxu2  ;;  %v587_v30 = vadd.f32 %v4292_v3, %v407_v21 }
  0xdd   : > { %v1062_v41 = vshrl.u32 %v1027_v36, 16  ;;  %v1065_v42 = vshll.u32 %v1027_v36, 16  ;;  %v938_v44 = vadd.f32 %v4377_v46, %v904_v37 }
  0xde   : > { %v726_v39 = vadd.f32 %v708_v2, %v587_v30 }
  0xdf   : > { %v1064_v45 = vrot.slane %v1062_v41, 6  ;;  %v1067_v47 = vrot.slane %v1065_v42, 7  ;;  %v948_v48 = vmax.f32 %v938_v44, 0.0 }
  0xe1   : > { %v1068_v51 = vor.u32 %v1067_v47, %v1064_v45  ;;  %v1018_v52 = vmul.f32 %v979_v16, %v948_v48 }
  0xe2   : > { %v884_v55 = vpop.f32.mrf.mxu3 }
  0xe3   : > { %v1069_v56 = vsel %vm4430_vm12, %v1060_v50, %v1068_v51  ;;  %v1028_v57 = vpack.c.bf16 %v1018_v52, %v1018_v52  ;;  %v905_v58 = vadd.f32 %v884_v55, %v724_v53  ;;  %v3930_v59 = vld [vmem:[#allocation2] sm:$0xff]  ;;  %v1070_v11 = vrot.slane %v1068_v51, 4  ;;  %v994_v4 = vpop.permute.xlu2 %993 }
  0xe4   : > { %1165 = vst [vmem:[#allocation2 + $0x8] sm:$0xf] %v1069_v56  ;;  %1403 = vmatmul.bf16.vlgmr.msrb.gmra.mxu1 %v3930_v59  ;;  %v3943_v22 = vld [vmem:[#allocation2] sm:$0xff]  ;;  %v711_v34 = vpop.f32.mrf.mxu2 }
  0xe5   : > { %v1072_v61 = vshrl.u32 %v1028_v57, 16  ;;  %v1075_v62 = vshll.u32 %v1028_v57, 16  ;;  %v939_v63 = vadd.f32 %v4377_v46, %v905_v58  ;;  %v3956_v28 = vld [vmem:[#allocation2] sm:$0xf0]  ;;  %v1518_v37 = vshll.u32 %v3943_v22, 16 }
  0xe6   : > { %v3442_v36 = vor.u32 %v3956_v28, %v3441_v27  ;;  %v3991_v51 = vld [vmem:[%s4795_s4 + $0x120] sm:$0xff]  ;;  %v1516_v57 = vshrl.u32 %v3943_v22, 16  ;;  %v589_v28 = vadd.f32 %v4312_v13, %v4288_v1 }
  0xe7   : > { %v1074_v6 = vrot.slane %v1072_v61, 6  ;;  %v1077_v7 = vrot.slane %v1075_v62, 7  ;;  %v949_v5 = vmax.f32 %v939_v63, 0.0  ;;  %v1520_v50 = vrot.slane %v1518_v37, 1  ;;  %2209 = vmatpush.bf16.msra.mxu1 %v3991_v51  ;;  %v3509_v2 = vld [vmem:[#allocation2 + $0x4] sm:$0xe] }
  0xe8   : > { %v1732_v48 = vrot.slane %v3442_v36, 1 }
  0xe9   : > { %v1078_v14 = vor.u32 %v1077_v7, %v1074_v6  ;;  %v1019_v15 = vmul.f32 %v984_v10, %v949_v5  ;;  %v1521_v6 = vor.u32 %v1520_v50, %v1516_v57 }
  0xea   : > { %v887_v17 = vpop.f32.mrf.mxu3 }
  0xeb   : > { %v1079_v18 = vsel %vm4430_vm12, %v1070_v11, %v1078_v14  ;;  %v1029_v19 = vpack.c.bf16 %v1019_v15, %v1019_v15  ;;  %v906_v20 = vadd.f32 %v887_v17, %v725_v12  ;;  %v1080_v38 = vrot.slane %v1078_v14, 4  ;;  %v3969_v56 = vld [vmem:[#allocation2 + $0x4] sm:$0xf0] }
  0xec   : > { %1166 = vst [vmem:[#allocation2 + $0xc] sm:$0xf] %v1079_v18  ;;  %v3510_v5 = vor.u32 %v3969_v56, %v3509_v2  ;;  %v727_v11 = vadd.f32 %v711_v34, %v4300_v8  ;;  %v713_v15 = vpop.f32.mrf.mxu2  ;;  %v3990_v8 = vld [vmem:[%s4795_s4 + $0x118] sm:$0xff] }
  0xed   : > { %v1082_v23 = vshrl.u32 %v1029_v19, 16  ;;  %v1085_v25 = vshll.u32 %v1029_v19, 16  ;;  %v940_v26 = vadd.f32 %v4377_v46, %v906_v20  ;;  %2210 = vmatpush.bf16.msra.mxu1 %v3990_v8  ;;  %v728_v36 = vadd.f32 %v713_v15, %v589_v28  ;;  %v4019_v15 = vld [vmem:[%s4795_s4 + $0x1b0] sm:$0xff] }
  0xee   : > { %v1916_v22 = vrot.slane %v3510_v5, 1 }
  0xef   : > { %v1084_v31 = vrot.slane %v1082_v23, 6  ;;  %v1087_v32 = vrot.slane %v1085_v25, 7  ;;  %v950_v33 = vmax.f32 %v940_v26, 0.0 }
  0xf1   : > { %v1088_v40 = vor.u32 %v1087_v32, %v1084_v31  ;;  %v1020_v41 = vmul.f32 %v989_v29, %v950_v33  ;;  %v999_v33 = vpop.permute.xlu0 %998 }
  0xf2   : > { %v889_v42 = vpop.f32.mrf.mxu3 }
  0xf3   : > { %v1089_v43 = vsel %vm4430_vm12, %v1080_v38, %v1088_v40  ;;  %v1030_v44 = vpack.c.bf16 %v1020_v41, %v1020_v41  ;;  %v907_v16 = vadd.f32 %v889_v42, %v726_v39  ;;  %v3931_v45 = vld [vmem:[#allocation2 + $0x8] sm:$0xff]  ;;  %v1090_v10 = vrot.slane %v1088_v40, 4 }
  0xf4   : > { %v4447_v47 = vld [vmem:[#allocation2 + $0x8] sm:$0xff]  ;;  %1167 = vst [vmem:[#allocation2 + $0x10] sm:$0xf] %v1089_v43  ;;  %1408 = vmatmul.bf16.gmra.mxu1 %v3931_v45 }
  0xf5   : > { %v4449_v3 = vld [vmem:[#allocation2 + $0x8] sm:$0xff]  ;;  %v1092_v52 = vshrl.u32 %v1030_v44, 16  ;;  %v1095_v53 = vshll.u32 %v1030_v44, 16  ;;  %v941_v54 = vadd.f32 %v4377_v46, %v907_v16  ;;  %v1733_v55 = vrot.slane %v4447_v47, 1  ;;  %v716_v44 = vpop.f32.mrf.mxu2  ;;  %v4020_v47 = vld [vmem:[%s4795_s4 + $0x1b8] sm:$0xff] }
  0xf6   : > { %v1523_v58 = vshll.u32 %v4449_v3, 16  ;;  %v1527_v51 = vshrl.u32 %v4449_v3, 16  ;;  %v3988_v3 = vld [vmem:[%s4795_s4 + $0x108] sm:$0xff]  ;;  %2575 = vmatpush.bf16.msrb.mxu3 %v4020_v47 }
  0xf7   : > { %v1094_v59 = vrot.slane %v1092_v52, 6  ;;  %v1097_v61 = vrot.slane %v1095_v53, 7  ;;  %v951_v62 = vmax.f32 %v941_v54, 0.0  ;;  %v1734_v63 = vsel %vm654_vm2, %v1732_v48, %v1733_v55  ;;  %v3989_v53 = vld [vmem:[%s4795_s4 + $0x110] sm:$0xff]  ;;  %v4031_v47 = vld [vmem:[%s4795_s4 + $0x1e8] sm:$0xff] }
  0xf8   : > { %1804 = vmatmul.bf16.vlgmr.msra.gmra.mxu3 %v1734_v63  ;;  %v1525_v7 = vrot.slane %v1523_v58, 1  ;;  %2211 = vmatpush.bf16.msra.mxu1 %v3989_v53  ;;  %v4007_v63 = vld [vmem:[%s4795_s4 + $0x178] sm:$0xff] }
  0xf9   : > { %v1098_v12 = vor.u32 %v1097_v61, %v1094_v59  ;;  %v1021_v14 = vmul.f32 %v994_v4, %v951_v62  ;;  %v1004_v59 = vpop.permute.xlu1 %1003  ;;  %2391 = vmatpush.bf16.msrb.mxu2 %v4007_v63  ;;  %v4016_v63 = vld [vmem:[%s4795_s4 + $0x198] sm:$0xff] }
  0xfa   : > { %v892_v17 = vpop.f32.mrf.mxu3  ;;  %v1526_v18 = vsel %vm482_vm1, %v1521_v6, %v1525_v7  ;;  %v1529_v61 = vor.u32 %v1527_v51, %v1525_v7  ;;  %2576 = vmatpush.bf16.msrb.mxu3 %v4019_v15  ;;  %v4046_v51 = vld [vmem:[%s4795_s4 + $0x238] sm:$0xff] }
  0xfb   : > { %v1099_v19 = vsel %vm4430_vm12, %v1090_v10, %v1098_v12  ;;  %v1031_v20 = vpack.c.bf16 %v1021_v14, %v1021_v14  ;;  %v908_v21 = vadd.f32 %v892_v17, %v727_v11  ;;  %1620 = vmatmul.bf16.vlgmr.msra.gmra.mxu2 %v1526_v18  ;;  %v4464_v0 = vld [vmem:[#allocation2 + $0xc] sm:$0xff]  ;;  %v1100_v34 = vrot.slane %v1098_v12, 4 }
  0xfc   : > { %1168 = vst [vmem:[#allocation2 + $0x14] sm:$0xf] %v1099_v19  ;;  %v1917_v27 = vrot.slane %v4464_v0, 1  ;;  %2212 = vmatpush.bf16.msra.mxu1 %v3988_v3  ;;  %v4006_v17 = vld [vmem:[%s4795_s4 + $0x170] sm:$0xff] }
  0xfd   : > { %v1102_v23 = vshrl.u32 %v1031_v20, 16  ;;  %v1105_v25 = vshll.u32 %v1031_v20, 16  ;;  %v942_v26 = vadd.f32 %v4377_v46, %v908_v21  ;;  %v718_v8 = vpop.f32.mrf.mxu2  ;;  %2392 = vmatpush.bf16.msrb.mxu2 %v4006_v17 }
  0xfe   : > { %v1918_v32 = vsel %vm654_vm2, %v1916_v22, %v1917_v27  ;;  %v591_v22 = vadd.f32 %v4357_v35, %v4302_v9  ;;  %v4018_v9 = vld [vmem:[%s4795_s4 + $0x1a8] sm:$0xff]  ;;  %v4033_v35 = vld [vmem:[%s4795_s4 + $0x1f8] sm:$0xff] }
  0xff   : > { %v1104_v29 = vrot.slane %v1102_v23, 6  ;;  %v1107_v30 = vrot.slane %v1105_v25, 7  ;;  %v952_v31 = vmax.f32 %v942_v26, 0.0  ;;  %1988 = vmatmul.bf16.vlgmr.msra.gmra.mxu0 %v1918_v32  ;;  %v4525_v23 = vpop.f32.mrf.mxu0  ;;  %2577 = vmatpush.bf16.msrb.mxu3 %v4018_v9 }
 0x100   : > { %2802 = vmatpush.bf16.msrb.mxu0 %v4033_v35 }
 0x101   : > { %v1108_v37 = vor.u32 %v1107_v30, %v1104_v29  ;;  %v1022_v38 = vmul.f32 %v999_v33, %v952_v31  ;;  %v1009_v30 = vpop.permute.xlu2 %1008  ;;  %v4005_v31 = vld [vmem:[%s4795_s4 + $0x168] sm:$0xff]  ;;  %v730_v33 = vadd.f32 %v718_v8, %v591_v22 }
 0x102   : > { %v894_v39 = vpop.f32.mrf.mxu3  ;;  %2393 = vmatpush.bf16.msrb.mxu2 %v4005_v31  ;;  %v4014_v8 = vld [vmem:[%s4795_s4 + $0x188] sm:$0xff] }
 0x103   : > { %v1109_v40 = vsel %vm4430_vm12, %v1100_v34, %v1108_v37  ;;  %v1032_v41 = vpack.c.bf16 %v1022_v38, %v1022_v38  ;;  %v909_v1 = vadd.f32 %v894_v39, %v728_v36  ;;  %v3932_v13 = vld [vmem:[#allocation2 + $0x10] sm:$0xff]  ;;  %v1110_v2 = vrot.slane %v1108_v37, 4 }
 0x104   : > { %v4478_v42 = vld [vmem:[#allocation2 + $0x10] sm:$0xff]  ;;  %1169 = vst [vmem:[#allocation2 + $0x18] sm:$0xf] %v1109_v40  ;;  %1413 = vmatmul.bf16.gmra.mxu1 %v3932_v13 }
 0x105   : > { %v4480_v43 = vld [vmem:[#allocation2 + $0x10] sm:$0xff]  ;;  %v1112_v16 = vshrl.u32 %v1032_v41, 16  ;;  %v1115_v45 = vshll.u32 %v1032_v41, 16  ;;  %v943_v48 = vadd.f32 %v4377_v46, %v909_v1  ;;  %v1735_v50 = vrot.slane %v4478_v42, 1  ;;  %v4017_v1 = vld [vmem:[%s4795_s4 + $0x1a0] sm:$0xff] }
 0x106   : > { %v1531_v52 = vshll.u32 %v4480_v43, 16  ;;  %v4032_v13 = vld [vmem:[%s4795_s4 + $0x1f0] sm:$0xff]  ;;  %v1535_v53 = vshrl.u32 %v4480_v43, 16  ;;  %2578 = vmatpush.bf16.msrb.mxu3 %v4017_v1 }
 0x107   : > { %v1114_v54 = vrot.slane %v1112_v16, 6  ;;  %v1117_v56 = vrot.slane %v1115_v45, 7  ;;  %v953_v57 = vmax.f32 %v943_v48, 0.0  ;;  %v1736_v58 = vsel %vm654_vm2, %v1733_v55, %v1735_v50  ;;  %2803 = vmatpush.bf16.msrb.mxu0 %v4032_v13 }
 0x108   : > { %1809 = vmatmul.bf16.gmra.mxu3 %v1736_v58  ;;  %v4494_v62 = vrot.slane %v1531_v52, 1  ;;  %v729_v55 = vadd.f32 %v716_v44, %v4332_v24  ;;  %v3987_v24 = vld [vmem:[%s4795_s4 + $0x100] sm:$0xff] }
 0x109   : > { %v1118_v4 = vor.u32 %v1117_v56, %v1114_v54  ;;  %v1023_v6 = vmul.f32 %v1004_v59, %v953_v57  ;;  %2213 = vmatpush.bf16.msra.mxu1 %v3987_v24  ;;  %v4004_v52 = vld [vmem:[%s4795_s4 + $0x160] sm:$0xff]  ;;  %v4563_v56 = vpop.f32.mrf.mxu0 }
 0x10a   : > { %v897_v7 = vpop.f32.mrf.mxu3  ;;  %v1534_v5 = vsel %vm482_vm1, %v1529_v61, %v4494_v62  ;;  %2394 = vmatpush.bf16.msrb.mxu2 %v4004_v52  ;;  %v1014_v61 = vpop.permute.xlu0 %1013  ;;  %v1537_v43 = vor.u32 %v1535_v53, %v4494_v62  ;;  %2579 = vmatpush.bf16.msrb.mxu3 %v4016_v63  ;;  %v4003_v62 = vld [vmem:[%s4795_s4 + $0x158] sm:$0xff]  ;;  %v4044_v52 = vld [vmem:[%s4795_s4 + $0x228] sm:$0xff] }
 0x10b   : > { %v1119_v10 = vsel %vm4430_vm12, %v1110_v2, %v1118_v4  ;;  %v1033_v11 = vpack.c.bf16 %v1023_v6, %v1023_v6  ;;  %v910_v12 = vadd.f32 %v897_v7, %v729_v55  ;;  %1625 = vmatmul.bf16.gmra.mxu2 %v1534_v5  ;;  %v4510_v14 = vld [vmem:[#allocation2 + $0x14] sm:$0xff]  ;;  %v1120_v32 = vrot.slane %v1118_v4, 4  ;;  %2804 = vmatpush.bf16.msrb.mxu0 %v4031_v47 }
 0x10c   : > { %1170 = vst [vmem:[#allocation2 + $0x1c] sm:$0xf] %v1119_v10  ;;  %v1919_v21 = vrot.slane %v4510_v14, 1  ;;  %v4015_v5 = vld [vmem:[%s4795_s4 + $0x190] sm:$0xff]  ;;  %v4030_v10 = vld [vmem:[%s4795_s4 + $0x1e0] sm:$0xff] }
 0x10d   : > { %v1122_v18 = vshrl.u32 %v1033_v11, 16  ;;  %v1125_v19 = vshll.u32 %v1033_v11, 16  ;;  %v944_v20 = vadd.f32 %v4377_v46, %v910_v12  ;;  %2987 = vmatpush.bf16.msrb.mxu1 %v4046_v51  ;;  %v4002_v11 = vld [vmem:[%s4795_s4 + $0x150] sm:$0xff]  ;;  %v1174_v14 = vld [vmem:[#allocation2 + $0x2c] sm:$0x3] }
 0x10e   : > { %v1920_v29 = vsel %vm654_vm2, %v1917_v27, %v1919_v21  ;;  %2395 = vmatpush.bf16.msrb.mxu2 %v4003_v62  ;;  %v4045_v12 = vld [vmem:[%s4795_s4 + $0x230] sm:$0xff]  ;;  %2580 = vmatpush.bf16.msrb.mxu3 %v4015_v5  ;;  %v4027_v51 = vld [vmem:[%s4795_s4 + $0x1c8] sm:$0xff]  ;;  %v4043_v5 = vld [vmem:[%s4795_s4 + $0x220] sm:$0xff] }
 0x10f   : > { %v1124_v25 = vrot.slane %v1122_v18, 6  ;;  %v1127_v26 = vrot.slane %v1125_v19, 7  ;;  %v954_v28 = vmax.f32 %v944_v20, 0.0  ;;  %1993 = vmatmul.bf16.gmra.mxu0 %v1920_v29 }
 0x110   : > { %2805 = vmatpush.bf16.msrb.mxu0 %v4030_v10 }
 0x111   : > { %v1128_v0 = vor.u32 %v1127_v26, %v1124_v25  ;;  %v1024_v34 = vmul.f32 %v1009_v30, %v954_v28  ;;  %v4601_v18 = vpop.f32.mrf.mxu0  ;;  %2988 = vmatpush.bf16.msrb.mxu1 %v4045_v12  ;;  %v4029_v25 = vld [vmem:[%s4795_s4 + $0x1d8] sm:$0xff]  ;;  %v4001_v26 = vld [vmem:[%s4795_s4 + $0x148] sm:$0xff] }
 0x112   : > { %v899_v27 = vpop.f32.mrf.mxu3  ;;  %2396 = vmatpush.bf16.msrb.mxu2 %v4002_v11  ;;  %v3982_v30 = vld [vmem:[#allocation2 + $0x4] sm:$0xf0]  ;;  %2581 = vmatpush.bf16.msrb.mxu3 %v4014_v8 }
 0x113   : > { %v1129_v36 = vsel %vm4430_vm12, %v1120_v32, %v1128_v0  ;;  %v1034_v37 = vpack.c.bf16 %v1024_v34, %v1024_v34  ;;  %v911_v38 = vadd.f32 %v899_v27, %v730_v33  ;;  %v3933_v39 = vld [vmem:[#allocation2 + $0x18] sm:$0xff]  ;;  %v1130_v2 = vrot.slane %v1128_v0, 4  ;;  %v3983_v33 = vld [vmem:[#allocation2 + $0xc] sm:$0xff]  ;;  %v4013_v0 = vld [vmem:[%s4795_s4 + $0x180] sm:$0xff] }
 0x114   : > { %v4543_v40 = vld [vmem:[#allocation2 + $0x18] sm:$0xff]  ;;  %1171 = vst [vmem:[#allocation2 + $0x20] sm:$0xf] %v1129_v36  ;;  %1418 = vmatmul.bf16.gmra.mxu1 %v3933_v39  ;;  %2806 = vmatpush.bf16.msrb.mxu0 %v4029_v25  ;;  %v4028_v34 = vld [vmem:[%s4795_s4 + $0x1d0] sm:$0xff]  ;;  %v4000_v39 = vld [vmem:[%s4795_s4 + $0x140] sm:$0xff] }
 0x115   : > { %v4545_v41 = vld [vmem:[#allocation2 + $0x18] sm:$0xff]  ;;  %v1132_v44 = vshrl.u32 %v1034_v37, 16  ;;  %v1135_v16 = vshll.u32 %v1034_v37, 16  ;;  %v945_v45 = vadd.f32 %v4377_v46, %v911_v38  ;;  %v1737_v48 = vrot.slane %v4543_v40, 1  ;;  %v3577_v38 = vld [vmem:[#allocation2 + $0x4] sm:$0xe]  ;;  %2989 = vmatpush.bf16.msrb.mxu1 %v4044_v52 }
 0x116   : > { %v1539_v54 = vshll.u32 %v4545_v41, 16  ;;  %2397 = vmatpush.bf16.msrb.mxu2 %v4001_v26  ;;  %v1543_v36 = vshrl.u32 %v4545_v41, 16  ;;  %v3578_v1 = vor.u32 %v3982_v30, %v3577_v38  ;;  %2582 = vmatpush.bf16.msrb.mxu3 %v4013_v0  ;;  %v4042_v30 = vld [vmem:[%s4795_s4 + $0x218] sm:$0xff]  ;;  %v4673_v0 = vld [vmem:[#allocation2 + $0x10] sm:$0xff]  ;;  %v3995_v38 = vld [vmem:[#allocation2 + $0x4] sm:$0xf0] }
 0x117   : > { %v1134_v46 = vrot.slane %v1132_v44, 6  ;;  %v1137_v57 = vrot.slane %v1135_v16, 7  ;;  %v955_v58 = vmax.f32 %v945_v45, 0.0  ;;  %v1738_v59 = vsel %vm654_vm2, %v1735_v50, %v1737_v48 }
 0x118   : > { %1814 = vmatmul.bf16.gmra.mxu3 %v1738_v59  ;;  %v4571_v3 = vrot.slane %v1539_v54, 1  ;;  %2807 = vmatpush.bf16.msrb.mxu0 %v4028_v34  ;;  %v2109_v16 = vshrl.u32 %v3983_v33, 16  ;;  %v2112_v45 = vshll.u32 %v3983_v33, 16  ;;  %v2101_v40 = vshrl.u32 %v3578_v1, 16  ;;  %v4022_v34 = vld [vmem:[#allocation2 + $0x10] sm:$0xff] }
 0x119   : > { %v1138_v42 = vor.u32 %v1137_v57, %v1134_v46  ;;  %v1025_v55 = vmul.f32 %v1014_v61, %v955_v58  ;;  %v4637_v13 = vpop.f32.mrf.mxu0  ;;  %v2104_v54 = vshll.u32 %v3578_v1, 16  ;;  %2990 = vmatpush.bf16.msrb.mxu1 %v4043_v5  ;;  %v3996_v1 = vld [vmem:[#allocation2 + $0xc] sm:$0xff] }
 0x11a   : > { %v1542_v50 = vsel %vm482_vm1, %v1537_v43, %v4571_v3  ;;  %v1545_v44 = vor.u32 %v1543_v36, %v4571_v3  ;;  %2398 = vmatpush.bf16.msrb.mxu2 %v4000_v39  ;;  %v2111_v58 = vrot.slane %v2109_v16, 1  ;;  %v2114_v59 = vrot.slane %v2112_v45, 2  ;;  %v4026_v3 = vld [vmem:[%s4795_s4 + $0x1c0] sm:$0xff]  ;;  %v3781_v36 = vld [vmem:[#allocation2 + $0x8] sm:$0xc] }
 0x11b   : > { %v1139_v4 = vsel %vm4430_vm12, %v1130_v2, %v1138_v42  ;;  %v1035_v6 = vpack.c.bf16 %v1025_v55, %v1025_v55  ;;  %1630 = vmatmul.bf16.gmra.mxu2 %v1542_v50  ;;  %v4586_v7 = vld [vmem:[#allocation2 + $0x1c] sm:$0xff]  ;;  %v1140_v28 = vrot.slane %v1138_v42, 4  ;;  %v2103_v47 = vrot.slane %v2101_v40, 1 }
 0x11c   : > { %1172 = vst [vmem:[#allocation2 + $0x24] sm:$0xf] %v1139_v4  ;;  %v1921_v17 = vrot.slane %v4586_v7, 1  ;;  %2808 = vmatpush.bf16.msrb.mxu0 %v4027_v51  ;;  %v2106_v2 = vrot.slane %v2104_v54, 2  ;;  %v2115_v4 = vor.u32 %v2114_v59, %v2111_v58  ;;  %v2708_v16 = vshll.u32 %v4022_v34, 16  ;;  %v3985_v52 = vld [vmem:[#allocation2 + $0x1c] sm:$0xff] }
 0x11d   : > { %v1142_v24 = vshrl.u32 %v1035_v6, 16  ;;  %v1145_v15 = vshll.u32 %v1035_v6, 16  ;;  %2991 = vmatpush.bf16.msrb.mxu1 %v4042_v30 }
 0x11e   : > { %v1922_v22 = vsel %vm654_vm2, %v1919_v21, %v1921_v17  ;;  %v2107_v10 = vor.u32 %v2106_v2, %v2103_v47 }
 0x11f   : > { %v1144_v19 = vrot.slane %v1142_v24, 6  ;;  %v1147_v20 = vrot.slane %v1145_v15, 7  ;;  %1998 = vmatmul.bf16.gmra.mxu0 %v1922_v22 }
 0x120   : > { %2809 = vmatpush.bf16.msrb.mxu0 %v4026_v3  ;;  %v2116_v15 = vsel %vm793_vm3, %v2107_v10, %v2115_v4  ;;  %v2127_v3 = vshrl.u32 %v3985_v52, 16 }
 0x121   : > { %v1148_v29 = vor.u32 %v1147_v20, %v1144_v19  ;;  %v4653_v55 = vpop.f32.mrf.mxu0  ;;  %v3984_v19 = vld [vmem:[#allocation2 + $0x14] sm:$0xff] }
 0x122   : > { %v2118_v26 = vshrl.u32 %v3984_v19, 16 }
 0x123   : > { %v1149_v21 = vsel %vm4430_vm12, %v1140_v28, %v1148_v29  ;;  %v1150_v9 = vrot.slane %v1148_v29, 4  ;;  %v3934_v35 = vld [vmem:[#allocation2 + $0x20] sm:$0xff]  ;;  %v2121_v28 = vshll.u32 %v3984_v19, 16 }
 0x124   : > { %v4619_v31 = vld [vmem:[#allocation2 + $0x20] sm:$0xff]  ;;  %1173 = vst [vmem:[#allocation2 + $0x28] sm:$0xf] %v1149_v21  ;;  %1423 = vmatmul.bf16.gmra.mxu1 %v3934_v35  ;;  %v2120_v21 = vrot.slane %v2118_v26, 1  ;;  %v4008_v35 = vld [vmem:[#allocation2 + $0x8] sm:$0xf0] }
 0x125   : > { %v4621_v32 = vld [vmem:[#allocation2 + $0x20] sm:$0xff]  ;;  %v1175_v49 = vsel %vm4278_vm6, %v1150_v9, %v1174_v14  ;;  %v1739_v27 = vrot.slane %v4619_v31, 1  ;;  %v2123_v9 = vrot.slane %v2121_v28, 2  ;;  %v4021_v31 = vld [vmem:[#allocation2 + $0x8] sm:$0xf0] }
 0x126   : > { %v1547_v37 = vshll.u32 %v4621_v32, 16  ;;  %1176 = vst [vmem:[#allocation2 + $0x2c] sm:$0x3] %v1175_v49  ;;  %v1551_v7 = vshrl.u32 %v4621_v32, 16  ;;  %v3782_v39 = vor.u32 %v4021_v31, %v3781_v36 }
 0x127   : > { %v1740_v60 = vsel %vm654_vm2, %v1737_v48, %v1739_v27  ;;  %v2124_v49 = vor.u32 %v2123_v9, %v2120_v21 }
 0x128   : > { %v1549_v41 = vrot.slane %v1547_v37, 1  ;;  %1819 = vmatmul.bf16.gmra.mxu3 %v1740_v60  ;;  %v2512_v60 = vrot.slane %v4673_v0, 2  ;;  %v2697_v40 = vshrl.u32 %v3782_v39, 16  ;;  %v2700_v54 = vshll.u32 %v3782_v39, 16 }
 0x129   : > { %v4663_v20 = vpop.f32.mrf.mxu0  ;;  %v2125_v45 = vsel %vm793_vm3, %v2115_v4, %v2124_v49 }
 0x12a   : > { %v1550_v53 = vsel %vm482_vm1, %v1545_v44, %v1549_v41  ;;  %v1553_v25 = vor.u32 %v1551_v7, %v1549_v41  ;;  %v3645_v44 = vld [vmem:[#allocation2 + $0x4] sm:$0xc]  ;;  %v2705_v41 = vshrl.u32 %v4022_v34, 16  ;;  %v2699_v47 = vrot.slane %v2697_v40, 2  ;;  %v4040_v7 = vld [vmem:[%s4795_s4 + $0x208] sm:$0xff] }
 0x12b   : > { %1635 = vmatmul.bf16.gmra.mxu2 %v1550_v53  ;;  %v3973_v48 = vld [vmem:[#allocation2 + $0x24] sm:$0xff]  ;;  %v3646_v51 = vor.u32 %v3995_v38, %v3645_v44  ;;  %v2702_v2 = vrot.slane %v2700_v54, 3 }
 0x12c   : > { %v1686_v46 = vld [vmem:[#allocation2 + $0x28] sm:$0x1]  ;;  %v1923_v63 = vrot.slane %v3973_v48, 1  ;;  %v4041_v48 = vld [vmem:[%s4795_s4 + $0x210] sm:$0xff]  ;;  %v2707_v59 = vrot.slane %v2705_v41, 2 }
 0x12d   : > { %v1469_v57 = vld [vmem:[#allocation2 + $0x28] sm:$0x1]  ;;  %v1725_v61 = vunpack.c.l.b16 %v1686_v46  ;;  %v1870_v6 = vld [vmem:[#allocation2 + $0x2c] sm:$0x1]  ;;  %v2328_v46 = vrot.slane %v3996_v1, 2  ;;  %2992 = vmatpush.bf16.msrb.mxu1 %v4041_v48  ;;  %v2703_v5 = vor.u32 %v2702_v2, %v2699_v47  ;;  %v4011_v1 = vld [vmem:[#allocation2 + $0x20] sm:$0xff] }
 0x12e   : > { %v1508_v43 = vunpack.c.l.b16 %v1469_v57  ;;  %v1924_v50 = vsel %vm654_vm2, %v1921_v17, %v1923_v63  ;;  %v1909_v24 = vunpack.c.l.b16 %v1870_v6  ;;  %v4687_v6 = vld [vmem:[%s4796_s5] ss:$0 sm:$0xff]  ;;  %v3986_v28 = vld [vmem:[#allocation2 + $0x24] sm:$0xff] }
 0x12f   : > { %v1731_v62 = vpack.c.b16 %v1725_v61, %v1725_v61  ;;  %2003 = vmatmul.bf16.gmra.mxu0 %v1924_v50  ;;  %v2710_v61 = vrot.slane %v2708_v16, 3  ;;  %v2136_v31 = vshrl.u32 %v3986_v28, 16  ;;  %v1247_v38 = vadd.f32 %v4687_v6, %v4525_v23 }
 0x130   : > { %v1514_v42 = vpack.c.b16 %v1508_v43, %v1508_v43  ;;  %v1915_v8 = vpack.c.b16 %v1909_v24, %v1909_v24  ;;  %v2327_v43 = vrot.slane %v3646_v51, 2  ;;  %v4023_v24 = vld [vmem:[#allocation2 + $0x18] sm:$0xff] }
 0x131   : > { %v1741_v12 = vrot.slane %v1731_v62, 1  ;;  %v4670_v32 = vpop.f32.mrf.mxu0  ;;  %v2711_v50 = vor.u32 %v2710_v61, %v2707_v59  ;;  %v2129_v62 = vrot.slane %v2127_v3, 1  ;;  %2993 = vmatpush.bf16.msrb.mxu1 %v4040_v7 }
 0x132   : > { %v1555_v11 = vshll.u32 %v1514_v42, 16  ;;  %v1925_v14 = vrot.slane %v1915_v8, 1  ;;  %v2329_v42 = vsel %vm2326_vm13, %v2327_v43, %v2328_v46  ;;  %v2714_v8 = vshrl.u32 %v4023_v24, 16 }
 0x133   : > { %v1742_v22 = vsel %vm654_vm2, %v1739_v27, %v1741_v12  ;;  %v3713_v27 = vld [vmem:[#allocation2 + $0x8] sm:$0xc]  ;;  %v4010_v12 = vld [vmem:[#allocation2 + $0x18] sm:$0xff] }
 0x134   : > { %2214 = vmatmul.bf16.vlgmr.msra.gmra.mxu1 %v2116_v15  ;;  %v1557_v17 = vrot.slane %v1555_v11, 1  ;;  %v1926_v33 = vsel %vm654_vm2, %v1923_v63, %v1925_v14  ;;  %v3714_v37 = vor.u32 %v4008_v35, %v3713_v27  ;;  %v2130_v63 = vshll.u32 %v3985_v52, 16 }
 0x135   : > { %v2712_v11 = vsel %vm2695_vm14, %v2703_v5, %v2711_v50  ;;  %v2716_v21 = vrot.slane %v2714_v8, 2  ;;  %v2138_v27 = vrot.slane %v2136_v31, 1  ;;  %v2516_v52 = vrot.slane %v4011_v1, 2  ;;  %v4025_v5 = vld [vmem:[#allocation2 + $0x28] sm:$0xff] }
 0x136   : > { %v1558_v29 = vsel %vm482_vm1, %v1553_v25, %v1557_v17  ;;  %v2511_v53 = vrot.slane %v3714_v37, 2  ;;  %v2132_v4 = vrot.slane %v2130_v63, 2  ;;  %v3997_v17 = vld [vmem:[#allocation2 + $0x14] sm:$0xff]  ;;  %v2717_v25 = vshll.u32 %v4023_v24, 16  ;;  %v2054_v37 = vld [vmem:[#allocation2 + $0x2c] sm:$0x3] }
 0x137   : > { %v2093_v41 = vunpack.c.l.b16 %v2054_v37  ;;  %v2732_v7 = vshrl.u32 %v4025_v5, 16 }
 0x138   : > { %1824 = vmatmul.bf16.gmra.mxu3 %v1742_v22  ;;  %v2513_v58 = vsel %vm2326_vm13, %v2511_v53, %v2512_v60  ;;  %v2133_v19 = vor.u32 %v2132_v4, %v2129_v62  ;;  %v2514_v22 = vrot.slane %v4010_v12, 2  ;;  %v2719_v9 = vrot.slane %v2717_v25, 3  ;;  %v4012_v4 = vld [vmem:[#allocation2 + $0x28] sm:$0xff] }
 0x139   : > { %v4680_v57 = vpop.f32.mrf.mxu0  ;;  %v2099_v48 = vpack.c.b16 %v2093_v41, %v2093_v41  ;;  %v4716_v12 = vld [vmem:[#allocation2 + $0x24] sm:$0xff]  ;;  %v2734_v25 = vrot.slane %v2732_v7, 2 }
 0x13a   : > { %v2134_v26 = vsel %vm793_vm3, %v2124_v49, %v2133_v19  ;;  %v2515_v30 = vsel %vm2326_vm13, %v2512_v60, %v2514_v22  ;;  %v2720_v34 = vor.u32 %v2719_v9, %v2716_v21  ;;  %v4039_v49 = vld [vmem:[%s4795_s4 + $0x200] sm:$0xff]  ;;  %v2517_v23 = vsel %vm2326_vm13, %v2514_v22, %v2516_v52 }
 0x13b   : > { %1640 = vmatmul.bf16.gmra.mxu2 %v1558_v29  ;;  %v2330_v29 = vrot.slane %v3997_v17, 2  ;;  %2994 = vmatpush.bf16.msrb.mxu1 %v4039_v49  ;;  %v4024_v60 = vld [vmem:[#allocation2 + $0x20] sm:$0xff]  ;;  %v2145_v61 = vshrl.u32 %v2099_v48, 16  ;;  %v2148_v43 = vshll.u32 %v2099_v48, 16  ;;  %v2735_v17 = vshll.u32 %v4025_v5, 16  ;;  %v4035_v49 = vld [vmem:[#allocation2 + $0x10] sm:$0xff] }
 0x13c   : > { %v2721_v39 = vsel %vm2695_vm14, %v2711_v50, %v2720_v34  ;;  %v2723_v53 = vshrl.u32 %v4024_v60, 16  ;;  %v2726_v40 = vshll.u32 %v4024_v60, 16  ;;  %v1252_v50 = vadd.f32 %v4687_v6, %v4601_v18 }
 0x13d   : > { %v2331_v0 = vsel %vm2326_vm13, %v2328_v46, %v2330_v29  ;;  %v2147_v2 = vrot.slane %v2145_v61, 1  ;;  %v2334_v8 = vrot.slane %v4716_v12, 2  ;;  %v1257_v60 = vadd.f32 %v4687_v6, %v4653_v55 }
 0x13e   : > { %v2728_v59 = vrot.slane %v2726_v40, 3 }
 0x13f   : > { %2008 = vmatmul.bf16.gmra.mxu0 %v1926_v33  ;;  %v2139_v33 = vshll.u32 %v3986_v28, 16  ;;  %v2465_v28 = vld [vmem:[#allocation2 + $0x30] sm:$0x3] }
 0x140   : > { %v2504_v21 = vunpack.c.l.b16 %v2465_v28 }
 0x141   : > { %v1266_v10 = vpop.f32.mrf.mxu0  ;;  %v2141_v36 = vrot.slane %v2139_v33, 2  ;;  %v4034_v33 = vld [vmem:[#allocation2 + $0x8] sm:$0xf0] }
 0x142   : > { %v4691_v15 = vadd.f32 %v4687_v6, %v1266_v10 }
 0x143   : > { %v2142_v44 = vor.u32 %v2141_v36, %v2138_v27  ;;  %v3849_v36 = vld [vmem:[#allocation2 + $0x8] sm:$0x8] }
 0x144   : > { %2219 = vmatmul.bf16.gmra.mxu1 %v2125_v45  ;;  %v3998_v45 = vld [vmem:[#allocation2 + $0x1c] sm:$0xff] }
 0x145   : > { %v2143_v54 = vsel %vm793_vm3, %v2133_v19, %v2142_v44  ;;  %v2332_v46 = vrot.slane %v3998_v45, 2  ;;  %v2518_v19 = vrot.slane %v4012_v4, 2  ;;  %v2924_v45 = vrot.slane %v4035_v49, 3 }
 0x147   : > { %v2333_v63 = vsel %vm2326_vm13, %v2330_v29, %v2332_v46  ;;  %v2519_v18 = vsel %vm2326_vm13, %v2516_v52, %v2518_v19  ;;  %v2649_v29 = vld [vmem:[#allocation2 + $0x30] sm:$0x7] }
 0x148   : > { %2583 = vmatmul.bf16.vlgmr.msrb.gmra.mxu3 %v2513_v58  ;;  %v2725_v58 = vrot.slane %v2723_v53, 2  ;;  %v1249_v53 = vadd.f32 %v4687_v6, %v4563_v56 }
 0x149   : > { %v1268_v14 = vpop.f32.mrf.mxu0 }
 0x14a   : > { %v4699_v35 = vadd.f32 %v4687_v6, %v1268_v14  ;;  %v2729_v47 = vor.u32 %v2728_v59, %v2725_v58 }
 0x14b   : > { %2399 = vmatmul.bf16.vlgmr.msrb.gmra.mxu2 %v2329_v42  ;;  %v2150_v42 = vrot.slane %v2148_v43, 2 }
 0x14c   : > { %v2730_v62 = vsel %vm2695_vm14, %v2720_v34, %v2729_v47  ;;  %v2688_v34 = vunpack.c.l.b16 %v2649_v29 }
 0x14d   : > { %v2151_v10 = vor.u32 %v2150_v42, %v2147_v2 }
 0x14f   : > { %2810 = vmatmul.bf16.vlgmr.msrb.gmra.mxu0 %v2712_v11  ;;  %v2152_v22 = vsel %vm793_vm3, %v2142_v44, %v2151_v10 }
 0x154   : > { %2224 = vmatmul.bf16.gmra.mxu1 %v2134_v26  ;;  %v2737_v26 = vrot.slane %v2735_v17, 3 }
 0x156   : > { %v2738_v31 = vor.u32 %v2737_v26, %v2734_v25 }
 0x158   : > { %2588 = vmatmul.bf16.gmra.mxu3 %v2515_v30  ;;  %v2335_v30 = vsel %vm2326_vm13, %v2332_v46, %v2334_v8  ;;  %v2739_v41 = vsel %vm2695_vm14, %v2729_v47, %v2738_v31 }
 0x15b   : > { %2404 = vmatmul.bf16.gmra.mxu2 %v2331_v0  ;;  %v2280_v0 = vld [vmem:[#allocation2 + $0x2c] sm:$0x3] }
 0x15c   : > { %v2319_v1 = vunpack.c.l.b16 %v2280_v0 }
 0x15e   : > { %v2325_v46 = vpack.c.b16 %v2319_v1, %v2319_v1 }
 0x15f   : > { %2815 = vmatmul.bf16.gmra.mxu0 %v2721_v39  ;;  %v2510_v39 = vpack.c.b16 %v2504_v21, %v2504_v21 }
 0x160   : > { %v2336_v2 = vrot.slane %v2325_v46, 2 }
 0x161   : > { %v1404_v16 = vpop.f32.mrf.mxu1  ;;  %v2520_v48 = vrot.slane %v2510_v39, 2 }
 0x162   : > { %v1429_v51 = vadd.f32 %v1404_v16, %v1247_v38  ;;  %v3850_v38 = vor.u32 %v4034_v33, %v3849_v36  ;;  %v2694_v16 = vpack.c.b16 %v2688_v34, %v2688_v34  ;;  %v2337_v10 = vsel %vm2326_vm13, %v2334_v8, %v2336_v2 }
 0x163   : > { %v2521_v56 = vsel %vm2326_vm13, %v2518_v19, %v2520_v48  ;;  %v1254_v8 = vadd.f32 %v4687_v6, %v4637_v13 }
 0x164   : > { %2229 = vmatmul.bf16.gmra.mxu1 %v2143_v54  ;;  %v2923_v54 = vrot.slane %v3850_v38, 3  ;;  %v2741_v55 = vshrl.u32 %v2694_v16, 16  ;;  %v4037_v38 = vld [vmem:[#allocation2 + $0x20] sm:$0xff] }
 0x166   : > { %v2925_v61 = vsel %vm2922_vm15, %v2923_v54, %v2924_v45 }
 0x168   : > { %2593 = vmatmul.bf16.gmra.mxu3 %v2517_v23 }
 0x169   : > { %v4710_v3 = vpop.f32.mrf.mxu1 }
 0x16a   : > { %v1430_v43 = vadd.f32 %v4710_v3, %v1249_v53  ;;  %v4036_v3 = vld [vmem:[#allocation2 + $0x18] sm:$0xff] }
 0x16b   : > { %2409 = vmatmul.bf16.gmra.mxu2 %v2333_v63  ;;  %v2926_v26 = vrot.slane %v4036_v3, 3 }
 0x16d   : > { %v2927_v33 = vsel %vm2922_vm15, %v2924_v45, %v2926_v26 }
 0x16f   : > { %2820 = vmatmul.bf16.gmra.mxu0 %v2730_v62 }
 0x171   : > { %v1409_v11 = vpop.f32.mrf.mxu1 }
 0x172   : > { %v4718_v24 = vadd.f32 %v1409_v11, %v1252_v50  ;;  %v2743_v50 = vrot.slane %v2741_v55, 2 }
 0x174   : > { %2234 = vmatmul.bf16.gmra.mxu1 %v2152_v22 }
 0x178   : > { %2598 = vmatmul.bf16.gmra.mxu3 %v2519_v18  ;;  %v1262_v18 = vadd.f32 %v4687_v6, %v4670_v32 }
 0x179   : > { %v4723_v14 = vpop.f32.mrf.mxu1 }
 0x17a   : > { %v1432_v0 = vadd.f32 %v4723_v14, %v1254_v8 }
 0x17b   : > { %2414 = vmatmul.bf16.gmra.mxu2 %v2335_v30  ;;  %v1805_v9 = vpop.f32.mrf.mxu3 }
 0x17c   : > { %v1989_v27 = vpop.f32.mrf.mxu0 }
 0x17e   : > { %v1621_v37 = vpop.f32.mrf.mxu2 }
 0x17f   : > { %v1646_v44 = vadd.f32 %v1621_v37, %v1429_v51  ;;  %2825 = vmatmul.bf16.gmra.mxu0 %v2739_v41  ;;  %v2744_v51 = vshll.u32 %v2694_v16, 16  ;;  %v1259_v16 = vadd.f32 %v4687_v6, %v4663_v20 }
 0x181   : > { %v1830_v52 = vadd.f32 %v1805_v9, %v1646_v44  ;;  %v1414_v40 = vpop.f32.mrf.mxu1  ;;  %v2746_v62 = vrot.slane %v2744_v51, 3  ;;  %v2928_v44 = vrot.slane %v4037_v38, 3 }
 0x182   : > { %v1433_v58 = vadd.f32 %v1414_v40, %v1257_v60 }
 0x183   : > { %v4731_v23 = vadd.f32 %v1989_v27, %v1830_v52  ;;  %v1807_v59 = vpop.f32.mrf.mxu3  ;;  %v2747_v7 = vor.u32 %v2746_v62, %v2743_v50  ;;  %v2929_v53 = vsel %vm2922_vm15, %v2926_v26, %v2928_v44 }
 0x184   : > { %v1991_v63 = vpop.f32.mrf.mxu0  ;;  %2995 = vmatmul.bf16.vlgmr.msrb.gmra.mxu1 %v2925_v61 }
 0x185   : > { %v2748_v25 = vsel %vm2695_vm14, %v2738_v31, %v2747_v7  ;;  %v1264_v31 = vadd.f32 %v4687_v6, %v4680_v57 }
 0x186   : > { %v1623_v47 = vpop.f32.mrf.mxu2 }
 0x187   : > { %v1647_v42 = vadd.f32 %v1623_v47, %v1430_v43  ;;  %v4038_v43 = vld [vmem:[#allocation2 + $0x28] sm:$0xff] }
 0x188   : > { %2603 = vmatmul.bf16.gmra.mxu3 %v2521_v56  ;;  %v2930_v47 = vrot.slane %v4038_v43, 3 }
 0x189   : > { %v1831_v4 = vadd.f32 %v1807_v59, %v1647_v42  ;;  %v1416_v5 = vpop.f32.mrf.mxu1 }
 0x18a   : > { %v1434_v40 = vadd.f32 %v1416_v5, %v1259_v16  ;;  %v2931_v62 = vsel %vm2922_vm15, %v2928_v44, %v2930_v47 }
 0x18b   : > { %v4737_v11 = vadd.f32 %v1991_v63, %v1831_v4  ;;  %2419 = vmatmul.bf16.gmra.mxu2 %v2337_v10  ;;  %v1810_v12 = vpop.f32.mrf.mxu3  ;;  %v2876_v4 = vld [vmem:[#allocation2 + $0x30] sm:$0x7] }
 0x18c   : > { %v1994_v17 = vpop.f32.mrf.mxu0 }
 0x18e   : > { %v1626_v22 = vpop.f32.mrf.mxu2 }
 0x18f   : > { %v1648_v19 = vadd.f32 %v1626_v22, %v4718_v24  ;;  %2830 = vmatmul.bf16.gmra.mxu0 %v2748_v25 }
 0x191   : > { %v1832_v28 = vadd.f32 %v1810_v12, %v1648_v19  ;;  %v1419_v29 = vpop.f32.mrf.mxu1 }
 0x192   : > { %v1435_v21 = vadd.f32 %v1419_v29, %v1262_v18 }
 0x193   : > { %v4745_v30 = vadd.f32 %v1994_v17, %v1832_v28  ;;  %v1812_v9 = vpop.f32.mrf.mxu3 }
 0x194   : > { %v1996_v32 = vpop.f32.mrf.mxu0  ;;  %3000 = vmatmul.bf16.gmra.mxu1 %v2927_v33 }
 0x196   : > { %v1628_v24 = vpop.f32.mrf.mxu2 }
 0x197   : > { %v1649_v34 = vadd.f32 %v1628_v24, %v1432_v0 }
 0x199   : > { %v1833_v49 = vadd.f32 %v1812_v9, %v1649_v34  ;;  %v1421_v27 = vpop.f32.mrf.mxu1 }
 0x19a   : > { %v1436_v13 = vadd.f32 %v1421_v27, %v1264_v31 }
 0x19b   : > { %v4751_v36 = vadd.f32 %v1996_v32, %v1833_v49  ;;  %v1815_v37 = vpop.f32.mrf.mxu3 }
 0x19c   : > { %v1999_v39 = vpop.f32.mrf.mxu0 }
 0x19e   : > { %v1631_v1 = vpop.f32.mrf.mxu2 }
 0x19f   : > { %v1650_v60 = vadd.f32 %v1631_v1, %v1433_v58 }
 0x1a1   : > { %v1834_v41 = vadd.f32 %v1815_v37, %v1650_v60  ;;  %v1424_v14 = vpop.f32.mrf.mxu1 }
 0x1a2   : > { %v1437_v52 = vadd.f32 %v1424_v14, %v4691_v15 }
 0x1a3   : > { %v2018_v45 = vadd.f32 %v1999_v39, %v1834_v41  ;;  %v1817_v57 = vpop.f32.mrf.mxu3 }
 0x1a4   : > { %v2001_v54 = vpop.f32.mrf.mxu0  ;;  %3005 = vmatmul.bf16.gmra.mxu1 %v2929_v53 }
 0x1a6   : > { %v1633_v48 = vpop.f32.mrf.mxu2 }
 0x1a7   : > { %v1651_v46 = vadd.f32 %v1633_v48, %v1434_v40 }
 0x1a9   : > { %v1835_v59 = vadd.f32 %v1817_v57, %v1651_v46  ;;  %v1426_v55 = vpop.f32.mrf.mxu1 }
 0x1aa   : > { %v1438_v51 = vadd.f32 %v1426_v55, %v4699_v35  ;;  %v2915_v35 = vunpack.c.l.b16 %v2876_v4 }
 0x1ab   : > { %v2019_v58 = vadd.f32 %v2001_v54, %v1835_v59  ;;  %v1820_v61 = vpop.f32.mrf.mxu3 }
 0x1ac   : > { %v2004_v63 = vpop.f32.mrf.mxu0  ;;  %v2921_v18 = vpack.c.b16 %v2915_v35, %v2915_v35 }
 0x1ae   : > { %v1636_v20 = vpop.f32.mrf.mxu2 }
 0x1af   : > { %v1652_v6 = vadd.f32 %v1636_v20, %v1435_v21 }
 0x1b1   : > { %v1836_v15 = vadd.f32 %v1820_v61, %v1652_v6  ;;  %v2215_v2 = vpop.f32.mrf.mxu1 }
 0x1b2   : > { %v2240_v56 = vadd.f32 %v2215_v2, %v4731_v23  ;;  %v2932_v23 = vrot.slane %v2921_v18, 3 }
 0x1b3   : > { %v2020_v42 = vadd.f32 %v2004_v63, %v1836_v15  ;;  %v1822_v50 = vpop.f32.mrf.mxu3 }
 0x1b4   : > { %3010 = vmatmul.bf16.gmra.mxu1 %v2931_v62  ;;  %v2006_v10 = vpop.f32.mrf.mxu0  ;;  %v2933_v33 = vsel %vm2922_vm15, %v2930_v47, %v2932_v23 }
 0x1b6   : > { %v1638_v5 = vpop.f32.mrf.mxu2 }
 0x1b7   : > { %v1653_v12 = vadd.f32 %v1638_v5, %v1436_v13 }
 0x1b9   : > { %v1837_v7 = vadd.f32 %v1822_v50, %v1653_v12  ;;  %v2217_v3 = vpop.f32.mrf.mxu1 }
 0x1ba   : > { %v2241_v22 = vadd.f32 %v2217_v3, %v4737_v11 }
 0x1bb   : > { %v2021_v17 = vadd.f32 %v2006_v10, %v1837_v7  ;;  %v1825_v19 = vpop.f32.mrf.mxu3 }
 0x1bc   : > { %v2009_v28 = vpop.f32.mrf.mxu0 }
 0x1be   : > { %v1641_v25 = vpop.f32.mrf.mxu2 }
 0x1bf   : > { %v1654_v26 = vadd.f32 %v1641_v25, %v1437_v52 }
 0x1c1   : > { %v1838_v29 = vadd.f32 %v1825_v19, %v1654_v26  ;;  %v2220_v8 = vpop.f32.mrf.mxu1 }
 0x1c2   : > { %v2242_v9 = vadd.f32 %v2220_v8, %v4745_v30 }
 0x1c3   : > { %v2022_v21 = vadd.f32 %v2009_v28, %v1838_v29  ;;  %v1827_v24 = vpop.f32.mrf.mxu3 }
 0x1c4   : > { %3015 = vmatmul.bf16.gmra.mxu1 %v2933_v33  ;;  %v2011_v31 = vpop.f32.mrf.mxu0 }
 0x1c6   : > { %v1643_v0 = vpop.f32.mrf.mxu2 }
 0x1c7   : > { %v1655_v32 = vadd.f32 %v1643_v0, %v1438_v51 }
 0x1c9   : > { %v1839_v34 = vadd.f32 %v1827_v24, %v1655_v32  ;;  %v2222_v11 = vpop.f32.mrf.mxu1 }
 0x1ca   : > { %v2243_v27 = vadd.f32 %v2222_v11, %v4751_v36 }
 0x1cb   : > { %v2023_v49 = vadd.f32 %v2011_v31, %v1839_v34  ;;  %v2584_v44 = vpop.f32.mrf.mxu3 }
 0x1cc   : > { %v2811_v16 = vpop.f32.mrf.mxu0 }
 0x1ce   : > { %v2400_v30 = vpop.f32.mrf.mxu2 }
 0x1cf   : > { %v2425_v59 = vadd.f32 %v2400_v30, %v2240_v56 }
 0x1d1   : > { %v2225_v13 = vpop.f32.mrf.mxu1  ;;  %v2609_v43 = vadd.f32 %v2584_v44, %v2425_v59 }
 0x1d2   : > { %v2244_v37 = vadd.f32 %v2225_v13, %v2018_v45 }
 0x1d3   : > { %v2586_v40 = vpop.f32.mrf.mxu3  ;;  %v2836_v20 = vadd.f32 %v2811_v16, %v2609_v43 }
 0x1d4   : > { %v2813_v54 = vpop.f32.mrf.mxu0 }
 0x1d6   : > { %v2402_v52 = vpop.f32.mrf.mxu2 }
 0x1d7   : > { %v2426_v55 = vadd.f32 %v2402_v52, %v2241_v22 }
 0x1d9   : > { %v2227_v38 = vpop.f32.mrf.mxu1  ;;  %v2610_v63 = vadd.f32 %v2586_v40, %v2426_v55 }
 0x1da   : > { %v2245_v39 = vadd.f32 %v2227_v38, %v2019_v58 }
 0x1db   : > { %v2589_v46 = vpop.f32.mrf.mxu3  ;;  %v2837_v47 = vadd.f32 %v2813_v54, %v2610_v63 }
 0x1dc   : > { %v2816_v58 = vpop.f32.mrf.mxu0 }
 0x1de   : > { %v2405_v36 = vpop.f32.mrf.mxu2 }
 0x1df   : > { %v2427_v56 = vadd.f32 %v2405_v36, %v2242_v9 }
 0x1e1   : > { %v2230_v1 = vpop.f32.mrf.mxu1  ;;  %v2611_v3 = vadd.f32 %v2589_v46, %v2427_v56 }
 0x1e2   : > { %v4764_v60 = vadd.f32 %v2230_v1, %v2020_v42 }
 0x1e3   : > { %v2591_v6 = vpop.f32.mrf.mxu3  ;;  %v2838_v19 = vadd.f32 %v2816_v58, %v2611_v3 }
 0x1e4   : > { %v2818_v42 = vpop.f32.mrf.mxu0 }
 0x1e6   : > { %v2407_v51 = vpop.f32.mrf.mxu2 }
 0x1e7   : > { %v2428_v12 = vadd.f32 %v2407_v51, %v2243_v27 }
 0x1e9   : > { %v2232_v41 = vpop.f32.mrf.mxu1 }
 0x1ea   : > { %v4766_v14 = vadd.f32 %v2232_v41, %v2021_v17  ;;  %v2612_v17 = vadd.f32 %v2591_v6, %v2428_v12 }
 0x1eb   : > { %v2594_v35 = vpop.f32.mrf.mxu3 }
 0x1ec   : > { %v2821_v22 = vpop.f32.mrf.mxu0  ;;  %v2839_v25 = vadd.f32 %v2818_v42, %v2612_v17 }
 0x1ee   : > { %v2410_v62 = vpop.f32.mrf.mxu2 }
 0x1ef   : > { %v2429_v33 = vadd.f32 %v2410_v62, %v2244_v37 }
 0x1f1   : > { %v2235_v57 = vpop.f32.mrf.mxu1  ;;  %v2613_v31 = vadd.f32 %v2594_v35, %v2429_v33 }
 0x1f2   : > { %v4768_v53 = vadd.f32 %v2235_v57, %v2022_v21 }
 0x1f3   : > { %v2596_v29 = vpop.f32.mrf.mxu3  ;;  %v2840_v27 = vadd.f32 %v2821_v22, %v2613_v31 }
 0x1f4   : > { %v2823_v9 = vpop.f32.mrf.mxu0 }
 0x1f6   : > { %v2412_v18 = vpop.f32.mrf.mxu2 }
 0x1f7   : > { %v2430_v24 = vadd.f32 %v2412_v18, %v2245_v39 }
 0x1f9   : > { %v2237_v48 = vpop.f32.mrf.mxu1  ;;  %v2614_v11 = vadd.f32 %v2596_v29, %v2430_v24 }
 0x1fa   : > { %v4770_v45 = vadd.f32 %v2237_v48, %v2023_v49 }
 0x1fb   : > { %v2599_v49 = vpop.f32.mrf.mxu3  ;;  %v2841_v13 = vadd.f32 %v2823_v9, %v2614_v11 }
 0x1fc   : > { %v2826_v38 = vpop.f32.mrf.mxu0 }
 0x1fe   : > { %v2415_v32 = vpop.f32.mrf.mxu2 }
 0x1ff   : > { %v2431_v37 = vadd.f32 %v2415_v32, %v4764_v60 }
 0x201   : > { %v2996_v61 = vpop.f32.mrf.mxu1  ;;  %v2615_v36 = vadd.f32 %v2599_v49, %v2431_v37 }
 0x202   : > { %v3021_v15 = vadd.f32 %v2996_v61, %v2836_v20 }
 0x203   : > { %v2601_v40 = vpop.f32.mrf.mxu3  ;;  %v2842_v55 = vadd.f32 %v2826_v38, %v2615_v36 }
 0x204   : > { %v3051_v4 = vmax.f32 %v3021_v15, 0.0  ;;  %v2828_v48 = vpop.f32.mrf.mxu0 }
 0x206   : > { %v2417_v30 = vpop.f32.mrf.mxu2 }
 0x207   : > { %v2432_v39 = vadd.f32 %v2417_v30, %v4766_v14 }
 0x209   : > { %v2998_v2 = vpop.f32.mrf.mxu1  ;;  %v2616_v59 = vadd.f32 %v2601_v40, %v2432_v39 }
 0x20a   : > { %v3022_v50 = vadd.f32 %v2998_v2, %v2837_v47 }
 0x20b   : > { %v2843_v58 = vadd.f32 %v2828_v48, %v2616_v59  ;;  %v2604_v61 = vpop.f32.mrf.mxu3 }
 0x20c   : > { %v3052_v5 = vmax.f32 %v3022_v50, 0.0  ;;  %v2831_v60 = vpop.f32.mrf.mxu0 }
 0x20e   : > { %v4050_v10 = vpack.c.bf16 %v3052_v5, %v3051_v4  ;;  %v2420_v46 = vpop.f32.mrf.mxu2 }
 0x20f   : > { %v2433_v15 = vadd.f32 %v2420_v46, %v4768_v53 }
 0x210   : > { %4051 = vst [vmem:[%s4777_s26] sm:$0xff] %v4050_v10  }
 0x211   : > { %v3001_v7 = vpop.f32.mrf.mxu1  ;;  %v2617_v50 = vadd.f32 %v2604_v61, %v2433_v15 }
 0x212   : > { %v3023_v26 = vadd.f32 %v3001_v7, %v2838_v19 }
 0x213   : > { %v2606_v62 = vpop.f32.mrf.mxu3  ;;  %v2844_v5 = vadd.f32 %v2831_v60, %v2617_v50 }
 0x214   : > { %v3053_v8 = vmax.f32 %v3023_v26, 0.0  ;;  %v2833_v56 = vpop.f32.mrf.mxu0 }
 0x216   : > { %v2422_v47 = vpop.f32.mrf.mxu2 }
 0x217   : > { %v2434_v2 = vadd.f32 %v2422_v47, %v4770_v45 }
 0x219   : > { %v3003_v28 = vpop.f32.mrf.mxu1  ;;  %v2618_v4 = vadd.f32 %v2606_v62, %v2434_v2 }
 0x21a   : > { %v3024_v23 = vadd.f32 %v3003_v28, %v2839_v25 }
 0x21b   : > { %v2845_v10 = vadd.f32 %v2833_v56, %v2618_v4 }
 0x21c   : > { %v3054_v21 = vmax.f32 %v3024_v23, 0.0 }
 0x21e   : > { %v4055_v0 = vpack.c.bf16 %v3054_v21, %v3053_v8 }
 0x220   : > { %4072 = vst [vmem:[%s4777_s26 + $0x8] sm:$0xff] %v4055_v0  }
 0x221   : > { %v3006_v34 = vpop.f32.mrf.mxu1 }
 0x222   : > { %v3025_v1 = vadd.f32 %v3006_v34, %v2840_v27 }
 0x224   : > { %v3055_v16 = vmax.f32 %v3025_v1, 0.0 }
 0x229   : > { %v3008_v44 = vpop.f32.mrf.mxu1 }
 0x22a   : > { %v3026_v41 = vadd.f32 %v3008_v44, %v2841_v13 }
 0x22c   : > { %v3056_v52 = vmax.f32 %v3026_v41, 0.0 }
 0x22e   : > { %v4060_v57 = vpack.c.bf16 %v3056_v52, %v3055_v16 }
 0x230   : > { %4073 = vst [vmem:[%s4777_s26 + $0x10] sm:$0xff] %v4060_v57  }
 0x231   : > { %v3011_v54 = vpop.f32.mrf.mxu1 }
 0x232   : > { %v3027_v51 = vadd.f32 %v3011_v54, %v2842_v55 }
 0x234   : > { %v3057_v20 = vmax.f32 %v3027_v51, 0.0 }
 0x239   : > { %v3013_v43 = vpop.f32.mrf.mxu1 }
 0x23a   : > { %v3028_v63 = vadd.f32 %v3013_v43, %v2843_v58 }
 0x23c   : > { %v3058_v6 = vmax.f32 %v3028_v63, 0.0 }
 0x23e   : > { %v4065_v14 = vpack.c.bf16 %v3058_v6, %v3057_v20 }
 0x240   : > { %4074 = vst [vmem:[%s4777_s26 + $0x18] sm:$0xff] %v4065_v14  }
 0x241   : > { %v3016_v42 = vpop.f32.mrf.mxu1 }
 0x242   : > { %v3029_v12 = vadd.f32 %v3016_v42, %v2844_v5 }
 0x244   : > { %v3059_v3 = vmax.f32 %v3029_v12, 0.0 }
 0x249   : > { %v3018_v35 = vpop.f32.mrf.mxu1 }
 0x24a   : > { %v3030_v7 = vadd.f32 %v3018_v35, %v2845_v10 }
 0x24c   : > { %v3060_v17 = vmax.f32 %v3030_v7, 0.0 }
 0x24e   : > { %v4070_v22 = vpack.c.bf16 %v3060_v17, %v3059_v3 }
 0x250   : > { %4075 = vst [vmem:[%s4777_s26 + $0x20] sm:$0xff] %v4070_v22  }
 0x251 PF: > { %s18_s27 = sadd.s32 1, %s4100_s27  }
 0x252   : > { %p15_p4 = scmp.ge.s32.totalorder %s18_s27, 4  }
 0x254   :  { %17 = sbr.rel (!%p15_p4) target bundleno = 1 (0x1), region = 96 }

</bundles_post_ra>
